<compile_context>
chip_gen: v7x
topology: tpu7x:2x2x1
jax: 0.10.0
libtpu: 0.0.40
codegen_flags: <defaults>
</compile_context>

<pallas_src>
import functools

import jax
import jax.numpy as jnp
from jax import lax
from jax.experimental import pallas as pl
from jax.experimental.pallas import tpu as pltpu


def _round_up(v, m):
    return (v + m - 1) // m * m


def _pad_to(a, shape):
    pads = tuple((0, t - s) for s, t in zip(a.shape, shape))
    if any(p for _, p in pads):
        a = jnp.pad(a, pads)
    return a


# -----------------------------------------------------------------------------
# Kernels
# -----------------------------------------------------------------------------
def _gc_kernel_reassoc(adj_ref, h_ref, b_ref, o_ref, *, add_self,
                       normalize_embedding, use_bias, precision):
    """y = adj @ h (+ h_self) (+ bias) (+ l2norm), with h = x @ W precomputed."""
    # adj_ref: (Bt, tL, Lp)   h_ref: (Bt, Lp, Fp)   b_ref: (1, Fp)
    # o_ref:   (Bt, tL, Fp)
    tl = adj_ref.shape[1]
    y = jnp.einsum("bil,blf->bif", adj_ref[...], h_ref[...],
                   preferred_element_type=jnp.float32, precision=precision)
    if add_self:
        start = pl.multiple_of(pl.program_id(1) * tl, tl)
        y = y + h_ref[:, pl.ds(start, tl), :].astype(jnp.float32)
    if use_bias:
        y = y + b_ref[...]
    if normalize_embedding:
        # padded F columns are zero, so the norm over Fp == norm over F
        ssq = jnp.sum(y * y, axis=-1, keepdims=True)
        y = y * lax.rsqrt(jnp.maximum(ssq, 1e-24))   # EUP rsqrt + VALU mul
    o_ref[...] = y.astype(o_ref.dtype)


def _gc_kernel_fused(adj_ref, x_ref, w_ref, b_ref, o_ref, *, add_self,
                     normalize_embedding, use_bias, precision):
    """y = ((adj @ x) (+ x_self)) @ W (+ bias) (+ l2norm)."""
    # adj_ref: (Bt, tL, Lp)  x_ref: (Bt, Lp, Dp)  w_ref: (Dp, Fp)  b_ref: (1, Fp)
    bt, tl, _ = adj_ref.shape
    dp = x_ref.shape[2]
    fp = w_ref.shape[1]
    y = jnp.einsum("bil,bld->bid", adj_ref[...], x_ref[...],
                   preferred_element_type=jnp.float32, precision=precision)
    if add_self:
        start = pl.multiple_of(pl.program_id(1) * tl, tl)
        y = y + x_ref[:, pl.ds(start, tl), :].astype(jnp.float32)
    w = w_ref[...]
    # one lane-dense (Bt*tL, Dp) @ (Dp, Fp) MXU matmul for the whole block
    y = jnp.dot(y.astype(w.dtype).reshape(bt * tl, dp), w,
                preferred_element_type=jnp.float32,
                precision=precision).reshape(bt, tl, fp)
    if use_bias:
        y = y + b_ref[...]
    if normalize_embedding:
        ssq = jnp.sum(y * y, axis=-1, keepdims=True)
        y = y * lax.rsqrt(jnp.maximum(ssq, 1e-24))
    o_ref[...] = y.astype(o_ref.dtype)


# -----------------------------------------------------------------------------
# Wrapper
# -----------------------------------------------------------------------------
def graph_conv(x, adj, weight, bias=None, *, add_self=False,
               normalize_embedding=False, compute_dtype=None, out_dtype=None,
               batch_block=8, row_block=512):
    """Pallas TPU implementation of _GraphConv.forward (inference, dropout=0).

    compute_dtype=None / out_dtype=None keep the input dtype (usually f32), so
    no hidden cast/copy HBM pass over adj is created.  Pass jnp.bfloat16 to opt
    into half-precision streaming (ideally hand adj/x already in bf16).
    """
    B, L, D = x.shape
    F_out = weight.shape[1]
    use_bias = bias is not None

    if compute_dtype is None:
        compute_dtype = x.dtype
    if out_dtype is None:
        out_dtype = x.dtype
    compute_dtype = jnp.dtype(compute_dtype)
    out_dtype = jnp.dtype(out_dtype)
    c_it = compute_dtype.itemsize
    o_it = out_dtype.itemsize
    precision = (lax.Precision.HIGHEST
                 if compute_dtype == jnp.dtype(jnp.float32) else None)

    # ---- lane / MXU aligned geometry ----------------------------------------
    Lp = _round_up(L, 128)             # node dim: adj lane dim + contraction
    Dp = _round_up(D, 128)
    Fp = _round_up(F_out, 128)

    # Reassociate (stream h = x @ W, kernel does adj @ h) when the padded
    # output width costs no more MXU passes than the padded input width.
    mxu_n = 256
    reassociate = (pl.cdiv(Fp, mxu_n), Fp) < (pl.cdiv(Dp, mxu_n), Dp)
    stream_w = Fp if reassociate else Dp

    # Row-tile candidates: multiples of 128 that divide Lp (128 always does).
    tiles = [t for t in range(128, Lp + 1, 128) if Lp % t == 0]

    # ---- generation-aware VMEM sizing ----------------------------------------
    try:
        vmem_cap = pltpu.get_tpu_info().vmem_capacity_bytes
    except Exception:
        vmem_cap = 64 * 1024 * 1024                     # conservative fallback
    budget = max(32 * 1024 * 1024, vmem_cap - 16 * 1024 * 1024)

    def _working_set(bt, tl):
        s = 2 * bt * tl * Lp * c_it                     # adj block (2 buffers)
        s += 2 * bt * Lp * stream_w * c_it              # x or h block
        if not reassociate:
            s += 2 * Dp * Fp * c_it                     # weight
        s += 2 * Fp * 4                                 # bias
        s += 2 * bt * tl * Fp * o_it                    # output block
        s += 2 * bt * tl * max(Dp, Fp) * 4              # f32 intermediates
        return s

    tL = max(t for t in tiles if t <= max(row_block, 128))
    Bt = max(1, min(batch_block, B))
    while Bt > 1 and _working_set(Bt, tL) > budget:
        Bt //= 2
    while tL > 128 and _working_set(Bt, tL) > budget:
        tL = max(t for t in tiles if t < tL)

    Bp = _round_up(B, Bt)
    # give v7x's second TensorCore work: >= 2 "parallel" grid steps if possible
    if (Bp // Bt) * (Lp // tL) < 2:
        if B >= 2:
            Bt = min(Bt, (B + 1) // 2)
            Bp = _round_up(B, Bt)
        elif tL > 128:
            tL = max(t for t in tiles if t <= tL // 2)
    grid = (Bp // Bt, Lp // tL)

    # ---- prepare operands (zero padding only; cast only when requested) -----
    adj_c = adj if adj.dtype == compute_dtype else adj.astype(compute_dtype)
    adj_p = _pad_to(adj_c, (Bp, Lp, Lp))
    if use_bias:
        b_p = _pad_to(bias.astype(jnp.float32).reshape(1, F_out), (1, Fp))
    else:
        b_p = jnp.zeros((1, Fp), jnp.float32)

    if reassociate:
        # Hoist x @ W: one XLA matmul here instead of Lp/tL in-kernel recomputes;
        # the kernel then streams only adj and the (B, L, Fp) h tensor.
        h = jnp.matmul(x.astype(compute_dtype), weight.astype(compute_dtype),
                       precision=precision).astype(compute_dtype)
        operands = (adj_p, _pad_to(h, (Bp, Lp, Fp)), b_p)
        kernel_fn = _gc_kernel_reassoc
        kernel_flops = 2 * Bp * Lp * Lp * Fp
    else:
        x_c = x if x.dtype == compute_dtype else x.astype(compute_dtype)
        operands = (adj_p, _pad_to(x_c, (Bp, Lp, Dp)),
                    _pad_to(weight.astype(compute_dtype), (Dp, Fp)), b_p)
        kernel_fn = _gc_kernel_fused
        kernel_flops = 2 * Bp * Lp * Lp * Dp + 2 * Bp * Lp * Dp * Fp

    bytes_accessed = (sum(int(op.size) * op.dtype.itemsize for op in operands)
                      + Bp * Lp * Fp * o_it)
    transcendentals = Bp * Lp if normalize_embedding else 0
    vmem_limit = int(min(vmem_cap - 4 * 1024 * 1024,
                         max(32 * 1024 * 1024,
                             _working_set(Bt, tL) + 8 * 1024 * 1024)))

    def _build_in_specs(single_buffer):
        # weight / bias never change block index -> single-buffer them.
        pm = {"pipeline_mode": pl.Buffered(1)} if single_buffer else {}
        adj_spec = pl.BlockSpec((Bt, tL, Lp), lambda b, r: (b, r, 0))
        bias_spec = pl.BlockSpec((1, Fp), lambda b, r: (0, 0), **pm)
        if reassociate:
            return [adj_spec,
                    pl.BlockSpec((Bt, Lp, Fp), lambda b, r: (b, 0, 0)),
                    bias_spec]
        return [adj_spec,
                pl.BlockSpec((Bt, Lp, Dp), lambda b, r: (b, 0, 0)),
                pl.BlockSpec((Dp, Fp), lambda b, r: (0, 0), **pm),
                bias_spec]

    def _call(single_buffer, prec):
        kernel = functools.partial(kernel_fn, add_self=add_self,
                                   normalize_embedding=normalize_embedding,
                                   use_bias=use_bias, precision=prec)
        return pl.pallas_call(
            kernel,
            out_shape=jax.ShapeDtypeStruct((Bp, Lp, Fp), out_dtype),
            grid_spec=pltpu.PrefetchScalarGridSpec(
                num_scalar_prefetch=0,
                grid=grid,
                in_specs=_build_in_specs(single_buffer),
                out_specs=pl.BlockSpec((Bt, tL, Fp), lambda b, r: (b, r, 0)),
            ),
            compiler_params=pltpu.CompilerParams(
                dimension_semantics=("parallel", "parallel"),
                vmem_limit_bytes=vmem_limit),
            cost_estimate=pl.CostEstimate(
                flops=int(kernel_flops),
                transcendentals=int(transcendentals),
                bytes_accessed=int(bytes_accessed)),
        )(*operands)

    try:
        # best effort: single-buffered weight/bias + explicit f32 MXU precision
        out_p = _call(True, precision)
    except Exception:
        # fall back if the backend rejects Buffered(1) or explicit precision
        out_p = _call(False, None)

    if (Bp, Lp, Fp) == (B, L, F_out):
        return out_p                      # no padding -> no slice-copy pass
    return out_p[:B, :L, :F_out]


# -----------------------------------------------------------------------------
# Reference + self-test
# -----------------------------------------------------------------------------
def _reference(x, adj, weight, bias, add_self=False, normalize_embedding=False):
    y = jnp.matmul(adj, x, precision=lax.Precision.HIGHEST)
    if add_self:
        y = y + x
    y = jnp.matmul(y, weight, precision=lax.Precision.HIGHEST)
    if bias is not None:
        y = y + bias
    if normalize_embedding:
        norm = jnp.sqrt(jnp.sum(y * y, axis=2, keepdims=True))
        y = y / jnp.maximum(norm, 1e-12)
    return y


if __name__ == "__main__":
    key = jax.random.PRNGKey(0)
    kx, ka, kw, kb, kx2, kw2, kb2 = jax.random.split(key, 7)

    # small shapes consistent with the module: batch=2, num_nodes=8,
    # input_dim=16, output_dim=32
    B, L, D, F_out = 2, 8, 16, 32
    x = jax.random.normal(kx, (B, L, D), dtype=jnp.float32)
    adj_raw = jax.random.uniform(ka, (B, L, L), dtype=jnp.float32)
    adj = (adj_raw + jnp.swapaxes(adj_raw, 1, 2)) * 0.5
    weight = jax.random.normal(kw, (D, F_out), dtype=jnp.float32) * (
        2.0 / (D + F_out)) ** 0.5
    bias = jax.random.normal(kb, (F_out,), dtype=jnp.float32) * 0.1

    # 1) default f32 path (fused (adj@x)@W kernel), bias only
    out = jax.block_until_ready(graph_conv(x, adj, weight, bias))
    ref = _reference(x, adj, weight, bias)
    assert out.shape == (B, L, F_out)
    assert jnp.allclose(out, ref, atol=1e-3, rtol=1e-3), (
        float(jnp.max(jnp.abs(out - ref))))

    # 2) add_self + normalize_embedding
    out_n = jax.block_until_ready(
        graph_conv(x, adj, weight, bias, add_self=True,
                   normalize_embedding=True))
    ref_n = _reference(x, adj, weight, bias, add_self=True,
                       normalize_embedding=True)
    assert jnp.allclose(out_n, ref_n, atol=1e-3, rtol=1e-3), (
        float(jnp.max(jnp.abs(out_n - ref_n))))

    # 3) opt-in bf16 streaming path (relaxed tolerance)
    out_bf = jax.block_until_ready(
        graph_conv(x, adj, weight, bias, compute_dtype=jnp.bfloat16))
    assert out_bf.shape == (B, L, F_out)
    assert jnp.allclose(out_bf, ref, atol=5e-2, rtol=5e-2), (
        float(jnp.max(jnp.abs(out_bf - ref))))

    # 4) reassociated path: padded F (128) < padded D (256) -> adj @ (x @ W)
    D2, F2 = 192, 32
    x2 = jax.random.normal(kx2, (B, L, D2), dtype=jnp.float32)
    w2 = jax.random.normal(kw2, (D2, F2), dtype=jnp.float32) * (
        2.0 / (D2 + F2)) ** 0.5
    b2 = jax.random.normal(kb2, (F2,), dtype=jnp.float32) * 0.1
    out_r = jax.block_until_ready(
        graph_conv(x2, adj, w2, b2, add_self=True, normalize_embedding=True))
    ref_r = _reference(x2, adj, w2, b2, add_self=True,
                       normalize_embedding=True)
    assert jnp.allclose(out_r, ref_r, atol=1e-3, rtol=1e-3), (
        float(jnp.max(jnp.abs(out_r - ref_r))))

    print("KERNEL_OK")
</pallas_src>

<mosaic_0001>
module attributes {stable_mosaic.version = 11 : i64} {
  func.func @_gc_kernel_fused(%arg0: i32, %arg1: i32, %arg2: memref<1x128x128xf32, #tpu.memory_space<vmem>>, %arg3: memref<1x128x128xf32, #tpu.memory_space<vmem>>, %arg4: memref<128x128xf32, #tpu.memory_space<vmem>>, %arg5: memref<1x128xf32, #tpu.memory_space<vmem>>, %arg6: memref<1x128x128xf32, #tpu.memory_space<vmem>>) attributes {dimension_semantics = [#tpu.dimension_semantics<parallel>, #tpu.dimension_semantics<parallel>], iteration_bounds = array<i64: 2, 1>, scalar_prefetch = 0 : i64, scratch_operands = 0 : i64, tpu.core_type = #tpu.core_type<tc>, window_params = [{transform_indices = @transform_0, window_bounds = array<i64: 1, 128, 128>}, {transform_indices = @transform_1, window_bounds = array<i64: 1, 128, 128>}, {pipeline_mode = #tpu.pipeline_mode<synchronous>, transform_indices = @transform_2, window_bounds = array<i64: 128, 128>}, {pipeline_mode = #tpu.pipeline_mode<synchronous>, transform_indices = @transform_3, window_bounds = array<i64: 1, 128>}, {transform_indices = @transform_4, window_bounds = array<i64: 1, 128, 128>}]} {
    %c0 = arith.constant 0 : index
    %c0_0 = arith.constant 0 : index
    %c0_1 = arith.constant 0 : index
    %0 = vector.load %arg2[%c0, %c0_0, %c0_1] : memref<1x128x128xf32, #tpu.memory_space<vmem>>, vector<1x128x128xf32>
    %c0_2 = arith.constant 0 : index
    %c0_3 = arith.constant 0 : index
    %c0_4 = arith.constant 0 : index
    %1 = vector.load %arg3[%c0_2, %c0_3, %c0_4] : memref<1x128x128xf32, #tpu.memory_space<vmem>>, vector<1x128x128xf32>
    "tpu.trace_start"() <{level = 10 : i32, message = "bil,bld->bid"}> : () -> ()
    %cst = arith.constant dense<0.000000e+00> : vector<1x128x128xf32>
    %2 = tpu.matmul %0, %1, %cst {dimension_numbers = #tpu.dot_dimension_numbers<[2], [1], [1], [2], [0, 0, 0, 1, 1, 2], [0], [0]>, precision = #tpu.contract_precision<fp32>} : vector<1x128x128xf32>, vector<1x128x128xf32>, vector<1x128x128xf32> -> vector<1x128x128xf32>
    "tpu.trace_stop"() : () -> ()
    %c0_5 = arith.constant 0 : index
    %c0_6 = arith.constant 0 : index
    %3 = vector.load %arg4[%c0_5, %c0_6] : memref<128x128xf32, #tpu.memory_space<vmem>>, vector<128x128xf32>
    %4 = vector.shape_cast %2 : vector<1x128x128xf32> to vector<128x128xf32>
    %cst_7 = arith.constant dense<0.000000e+00> : vector<128x128xf32>
    %5 = tpu.matmul %4, %3, %cst_7 {dimension_numbers = #tpu.dot_dimension_numbers<[1], [0], [0], [1], [0, 0, 1, 1], [], []>, precision = #tpu.contract_precision<fp32>} : vector<128x128xf32>, vector<128x128xf32>, vector<128x128xf32> -> vector<128x128xf32>
    %6 = vector.shape_cast %5 : vector<128x128xf32> to vector<1x128x128xf32>
    %c0_8 = arith.constant 0 : index
    %c0_9 = arith.constant 0 : index
    %7 = vector.load %arg5[%c0_8, %c0_9] : memref<1x128xf32, #tpu.memory_space<vmem>>, vector<1x128xf32>
    %8 = vector.shape_cast %7 : vector<1x128xf32> to vector<1x1x128xf32>
    %9 = vector.broadcast %8 : vector<1x1x128xf32> to vector<1x128x128xf32>
    %10 = arith.addf %6, %9 : vector<1x128x128xf32>
    %c0_10 = arith.constant 0 : index
    %c0_11 = arith.constant 0 : index
    %c0_12 = arith.constant 0 : index
    %11 = vector.load %arg6[%c0_10, %c0_11, %c0_12] : memref<1x128x128xf32, #tpu.memory_space<vmem>>, vector<1x128x128xf32>
    tpu.vector_store %arg6[%c0_10, %c0_11, %c0_12], %10 {strides = array<i32>} : memref<1x128x128xf32, #tpu.memory_space<vmem>>, vector<1x128x128xf32>,
    return
  }
  func.func @transform_0(%arg0: i32, %arg1: i32) -> (i32, i32, i32) {
    %c0_i32 = arith.constant 0 : i32
    %c0_i32_0 = arith.constant 0 : i32
    return %arg0, %arg1, %c0_i32 : i32, i32, i32
  }
  func.func @transform_1(%arg0: i32, %arg1: i32) -> (i32, i32, i32) {
    %c0_i32 = arith.constant 0 : i32
    %c0_i32_0 = arith.constant 0 : i32
    %c0_i32_1 = arith.constant 0 : i32
    return %arg0, %c0_i32, %c0_i32_0 : i32, i32, i32
  }
  func.func @transform_2(%arg0: i32, %arg1: i32) -> (i32, i32) {
    %c0_i32 = arith.constant 0 : i32
    %c0_i32_0 = arith.constant 0 : i32
    %c0_i32_1 = arith.constant 0 : i32
    return %c0_i32, %c0_i32_0 : i32, i32
  }
  func.func @transform_3(%arg0: i32, %arg1: i32) -> (i32, i32) {
    %c0_i32 = arith.constant 0 : i32
    %c0_i32_0 = arith.constant 0 : i32
    %c0_i32_1 = arith.constant 0 : i32
    return %c0_i32, %c0_i32_0 : i32, i32
  }
  func.func @transform_4(%arg0: i32, %arg1: i32) -> (i32, i32, i32) {
    %c0_i32 = arith.constant 0 : i32
    %c0_i32_0 = arith.constant 0 : i32
    return %arg0, %arg1, %c0_i32 : i32, i32, i32
  }
}

module attributes {stable_mosaic.version = 11 : i64} {
  func.func @_gc_kernel_fused(%arg0: i32, %arg1: i32, %arg2: memref<1x128x128xf32, #tpu.memory_space<vmem>>, %arg3: memref<1x128x128xf32, #tpu.memory_space<vmem>>, %arg4: memref<128x128xf32, #tpu.memory_space<vmem>>, %arg5: memref<1x128xf32, #tpu.memory_space<vmem>>, %arg6: memref<1x128x128xf32, #tpu.memory_space<vmem>>) attributes {dimension_semantics = [#tpu.dimension_semantics<parallel>, #tpu.dimension_semantics<parallel>], iteration_bounds = array<i64: 2, 1>, scalar_prefetch = 0 : i64, scratch_operands = 0 : i64, tpu.core_type = #tpu.core_type<tc>, window_params = [{transform_indices = @transform_0, window_bounds = array<i64: 1, 128, 128>}, {transform_indices = @transform_1, window_bounds = array<i64: 1, 128, 128>}, {pipeline_mode = #tpu.pipeline_mode<synchronous>, transform_indices = @transform_2, window_bounds = array<i64: 128, 128>}, {pipeline_mode = #tpu.pipeline_mode<synchronous>, transform_indices = @transform_3, window_bounds = array<i64: 1, 128>}, {transform_indices = @transform_4, window_bounds = array<i64: 1, 128, 128>}]} {
    %c0 = arith.constant 0 : index
    %c0_0 = arith.constant 0 : index
    %c0_1 = arith.constant 0 : index
    %0 = vector.load %arg2[%c0, %c0_0, %c0_1] : memref<1x128x128xf32, #tpu.memory_space<vmem>>, vector<1x128x128xf32>
    %c0_2 = arith.constant 0 : index
    %c0_3 = arith.constant 0 : index
    %c0_4 = arith.constant 0 : index
    %1 = vector.load %arg3[%c0_2, %c0_3, %c0_4] : memref<1x128x128xf32, #tpu.memory_space<vmem>>, vector<1x128x128xf32>
    "tpu.trace_start"() <{level = 10 : i32, message = "bil,bld->bid"}> : () -> ()
    %cst = arith.constant dense<0.000000e+00> : vector<1x128x128xf32>
    %2 = tpu.matmul %0, %1, %cst {dimension_numbers = #tpu.dot_dimension_numbers<[2], [1], [1], [2], [0, 0, 0, 1, 1, 2], [0], [0]>} : vector<1x128x128xf32>, vector<1x128x128xf32>, vector<1x128x128xf32> -> vector<1x128x128xf32>
    "tpu.trace_stop"() : () -> ()
    %c0_5 = arith.constant 0 : index
    %c0_6 = arith.constant 0 : index
    %3 = vector.load %arg4[%c0_5, %c0_6] : memref<128x128xf32, #tpu.memory_space<vmem>>, vector<128x128xf32>
    %4 = vector.shape_cast %2 : vector<1x128x128xf32> to vector<128x128xf32>
    %cst_7 = arith.constant dense<0.000000e+00> : vector<128x128xf32>
    %5 = tpu.matmul %4, %3, %cst_7 {dimension_numbers = #tpu.dot_dimension_numbers<[1], [0], [0], [1], [0, 0, 1, 1], [], []>} : vector<128x128xf32>, vector<128x128xf32>, vector<128x128xf32> -> vector<128x128xf32>
    %6 = vector.shape_cast %5 : vector<128x128xf32> to vector<1x128x128xf32>
    %c0_8 = arith.constant 0 : index
    %c0_9 = arith.constant 0 : index
    %7 = vector.load %arg5[%c0_8, %c0_9] : memref<1x128xf32, #tpu.memory_space<vmem>>, vector<1x128xf32>
    %8 = vector.shape_cast %7 : vector<1x128xf32> to vector<1x1x128xf32>
    %9 = vector.broadcast %8 : vector<1x1x128xf32> to vector<1x128x128xf32>
    %10 = arith.addf %6, %9 : vector<1x128x128xf32>
    %c0_10 = arith.constant 0 : index
    %c0_11 = arith.constant 0 : index
    %c0_12 = arith.constant 0 : index
    %11 = vector.load %arg6[%c0_10, %c0_11, %c0_12] : memref<1x128x128xf32, #tpu.memory_space<vmem>>, vector<1x128x128xf32>
    tpu.vector_store %arg6[%c0_10, %c0_11, %c0_12], %10 {strides = array<i32>} : memref<1x128x128xf32, #tpu.memory_space<vmem>>, vector<1x128x128xf32>,
    return
  }
  func.func @transform_0(%arg0: i32, %arg1: i32) -> (i32, i32, i32) {
    %c0_i32 = arith.constant 0 : i32
    %c0_i32_0 = arith.constant 0 : i32
    return %arg0, %arg1, %c0_i32 : i32, i32, i32
  }
  func.func @transform_1(%arg0: i32, %arg1: i32) -> (i32, i32, i32) {
    %c0_i32 = arith.constant 0 : i32
    %c0_i32_0 = arith.constant 0 : i32
    %c0_i32_1 = arith.constant 0 : i32
    return %arg0, %c0_i32, %c0_i32_0 : i32, i32, i32
  }
  func.func @transform_2(%arg0: i32, %arg1: i32) -> (i32, i32) {
    %c0_i32 = arith.constant 0 : i32
    %c0_i32_0 = arith.constant 0 : i32
    %c0_i32_1 = arith.constant 0 : i32
    return %c0_i32, %c0_i32_0 : i32, i32
  }
  func.func @transform_3(%arg0: i32, %arg1: i32) -> (i32, i32) {
    %c0_i32 = arith.constant 0 : i32
    %c0_i32_0 = arith.constant 0 : i32
    %c0_i32_1 = arith.constant 0 : i32
    return %c0_i32, %c0_i32_0 : i32, i32
  }
  func.func @transform_4(%arg0: i32, %arg1: i32) -> (i32, i32, i32) {
    %c0_i32 = arith.constant 0 : i32
    %c0_i32_0 = arith.constant 0 : i32
    return %arg0, %arg1, %c0_i32 : i32, i32, i32
  }
}

</mosaic_0001>

<bundles_post_ra>
// kernel: tpu_custom_call.1
= control target key start
LH: loop header
LB: loop body
LE: loop exit
PB: predicated region body
PF: predicated region fallthrough
CT: control target
= control target key end

     0   :  { %s6464_s0 = inlined_call_operand.hbm [shape: f32[2,128,128], index: 0, kind: input, shape index: {}]   ;;  %s6465_s1 = inlined_call_operand.hbm [shape: f32[2,128,128], index: 1, kind: input, shape index: {}]   ;;  %s6466_s2 = inlined_call_operand.hbm [shape: f32[128,128], index: 2, kind: input, shape index: {}]   ;;  %s6467_s3 = inlined_call_operand.vmem [shape: f32[1,128], index: 3, kind: input, shape index: {}]   ;;  %s6468_s4 = inlined_call_operand.hbm [shape: f32[2,128,128], index: 4, kind: output, shape index: {}]  }
   0x1   :  { %6591 = sst [smem:[#allocation37_spill]] %s6464_s0 }
   0x2   :  { %6592 = sst [smem:[#allocation38_spill]] %s6466_s2 }
   0x3   :  { %9 = vsyncpa [#allocation3], 0 }
   0x4   :  { %11 = vsyncpa [#allocation3 + $0x1], 0 }
   0x5   :  { %12 = vsyncpa [#allocation6], 0 }
   0x6   :  { %14 = vsyncpa [#allocation6 + $0x1], 0 }
   0x7   :  { %15 = vsyncpa [#allocation4], 0 }
   0x8   :  { %17 = vsyncpa [#allocation4 + $0x1], 0  ;;  %s5004_s15 = smov 0   ;;  %s5006_s16 = smov 0  }
   0x9   :  { %s5008_s17 = smov 0   ;;  %s5010_s18 = smov 0  }
   0xa   :  { %s5012_s19 = smov 0   ;;  %s5014_s20 = smov 0  }
   0xb LB: > { %s5035_s21 = sadd.s32 4294967295, %s4969_s20   ;;  %s3085_s22 = sadd.s32 4294967294, %s4969_s20   ;;  %s4969_s20 = sphi %s5014_s20, %s23_s20   ;;  %s4965_s19 = sphi %s5012_s19, %s6767_s19   ;;  %s4961_s18 = sphi %s5010_s18, %s6766_s18   ;;  %s4957_s17 = sphi %s5008_s17, %s6765_s17   ;;  %s4953_s16 = sphi %s5006_s16, %s6764_s16   ;;  %s4949_s15 = sphi %s5004_s15, %s6763_s15  }
   0xc   : > { %p57_p0 = scmp.ne.s32.totalorder %s4953_s16, %s4949_s15  ;;  %p6469_p1 = scmp.eq.s32.totalorder %s5035_s21, 0 }
   0xd   : > { %p157_p3 = scmp.eq.s32.totalorder %s3085_s22, 1  ;;  %p3086_p5 = scmp.ge.s32.totalorder %s4969_s20, 1 }
   0xe   : > { %p5044_p4 = por %p6469_p1, %p57_p0  ;;  %p164_p7 = scmp.lt.s32.totalorder %s4969_s20, 3 }
   0xf   : > { %p5049_p6 = por %p157_p3, %p57_p0  ;;  %s4971_s26 = smov [#allocation7]  }
  0x10   : > { %s6593_s23 = scalar_select %p5044_p4, 1, 0 }
  0x11   : > { %s6594_s24 = scalar_select %p5049_p6, 1, 0 }
  0x12   : > { %p5054_p8 = pnand %p3086_p5, %p164_p7  ;;  %s176_s27 = sshll.u32 %s4971_s26, 4  ;;  %s177_s27 = int_to_ptr.vmem [resolvable:$true] %s176_s27 }
  0x13   : > { %s35_s29 = sadd.s32 1, %s4965_s19  ;;  %s6597_s2 = sld [smem:[#allocation38_spill]] }
  0x14   : > { %s6595_s25 = scalar_select %p5054_p8, 1, 0 }
  0x15   : > { %p4719_p9 = pneg %p5054_p8 }
  0x17   : > { %p5063_p11 = pnand %p4719_p9, %p6469_p1 }
  0x19   : > { %s4791_s6 = scalar_lea.hbm %s6597_s2, 2048  ;;  %p4793_p13 = pneg %p5063_p11 }
  0x1a   : > { %p4792_p12 = scmp.ne.s32.totalorder %s6597_s2, %s4791_s6  ;;  %p4798_p5 = scmp.lt.u32.totalorder %s4791_s6, %s6597_s2 }
  0x1c   : > { %p4794_p0 = pnand %p4793_p13, %p4792_p12 }
  0x1e   : > { %p4795_p3 = pneg %p4794_p0 }
  0x20   : > { %p4800_p7 = pnand %p4798_p5, %p4795_p3 }
  0x22   : > { %4803 = shalt.err (!%p4800_p7)
}
  0x23   : > { %s4804_s11 = scalar_lea.vmem %s177_s27, 2048  ;;  %p4812_p2 = scmp.lt.s32.totalorder %s177_s27, %s177_s27 }
  0x24   : > { %p4805_p9 = scmp.ne.s32.totalorder %s177_s27, %s4804_s11  ;;  %p4813_p6 = scmp.lt.s32.totalorder %s4804_s11, %s4804_s11 }
  0x26   : > { %p4807_p10 = pnand %p4805_p9, %p4793_p13  ;;  %p4814_p4 = por %p4813_p6, %p4812_p2 }
  0x28   : > { %p4808_p1 = pneg %p4807_p10 }
  0x2a   : > { %p4815_p8 = pnand %p4814_p4, %p4808_p1 }
  0x2c   : > { %4818 = shalt.err (!%p4815_p8)
}
  0x2d   : > { %s6472_s12 = smov 128   ;;  %s6474_s13 = smov 8  }
  0x2e   : > { %4722 = dma.hbm_to_vmem [thread:$0]  (!%p5063_p11), %s6597_s2, 2048, %s177_s27, [#allocation6], %s6472_s12, %s6472_s12, %s6474_s13  }
  0x2f   : > { %p37_p1 = scmp.ge.s32.totalorder %s35_s29, 2  ;;  %s44_s26 = sadd.s32 1, %s4957_s17 }
  0x30   : > { %p51_p2 = scmp.ne.s32.totalorder %s4957_s17, %s4953_s16  ;;  %p52_p4 = scmp.eq.s32.totalorder %s4969_s20, 0 }
  0x31   : > { %s6769_s29 = smov (%p37_p1, %s35_s29), 0  ;;  %p6600_p8 = scmp.eq.s32.totalorder %s5035_s21, 1 }
  0x32   : > { %6598 = sst [smem:[#allocation13_spill]] %s6769_s29  ;;  %p5093_p6 = por %p52_p4, %p51_p2 }
  0x33   : > { %p5099_p10 = por %p6600_p8, %p51_p2  ;;  %s39_s5 = ssub.s32 %s4965_s19, %s6769_s29 }
  0x34   : > { %p4735_p12 = scmp.lt.s32.totalorder %s4969_s20, 2  ;;  %p42_p11 = scmp.eq.s32.totalorder %s39_s5, 0 }
  0x35   : > { %s193_s27 = sand.u32 1, %s4957_s17   ;;  %s3106_s8 = sshll.u32 %s4965_s19, 11 }
  0x36   : > { %s3089_s6 = sshll.u32 %s193_s27, 7  ;;  %s6602_s0 = sld [smem:[#allocation37_spill]] }
  0x37   : > { %s5108_s7 = scalar_select %p42_p11, %s4957_s17, %s44_s26  }
  0x38   : > { %s197_s14 = scalar_lea.vmem [#allocation2], %s3089_s6  ;;  %p5120_p13 = pnand %p4735_p12, %p5093_p6 }
  0x39   : > { %s206_s22 = sshll.u32 %s197_s14, 4  ;;  %s5127_s9 = scalar_lea.hbm %s6465_s1, %s3106_s8  ;;  %s5116_s22 = int_to_ptr.vmem [resolvable:$true] %s206_s22 }
  0x3a   : > { %s220_s10 = scalar_lea.vmem [#allocation5], %s3089_s6  ;;  %s5131_s2 = scalar_lea.sflag [#allocation3], %s193_s27 }
  0x3b   : > { %s5129_s13 = sshll.u32 %s220_s10, 4  ;;  %p4821_p3 = pneg %p5120_p13  ;;  %s5163_s13 = int_to_ptr.vmem [resolvable:$true] %s5129_s13 }
  0x3c   : > { %s5114_s11 = scalar_lea.hbm %s6602_s0, %s3106_s8  ;;  %s4824_s12 = scalar_lea.hbm %s6602_s0, 4096 }
  0x3d   : > { %s4819_s14 = scalar_lea.hbm %s5114_s11, 2048  ;;  %p4825_p9 = scmp.lt.u32.totalorder %s5114_s11, %s6602_s0 }
  0x3e   : > { %p4820_p0 = scmp.ne.s32.totalorder %s5114_s11, %s4819_s14  ;;  %p4826_p1 = scmp.lt.u32.totalorder %s4824_s12, %s4819_s14 }
  0x3f   : > { %p4828_p4 = scmp.lt.u32.totalorder %s4819_s14, %s5114_s11 }
  0x40   : > { %p4822_p5 = pnand %p4821_p3, %p4820_p0  ;;  %p4827_p2 = por %p4826_p1, %p4825_p9 }
  0x42   : > { %p4823_p7 = pneg %p4822_p5  ;;  %p4829_p6 = por %p4828_p4, %p4827_p2 }
  0x44   : > { %p4830_p8 = pnand %p4829_p6, %p4823_p7 }
  0x46   : > { %4833 = shalt.err (!%p4830_p8)
}
  0x47   : > { %s4834_s27 = scalar_lea.vmem %s5116_s22, 2048  ;;  %s4974_s29 = smov [#allocation2]  }
  0x48   : > { %p4835_p12 = scmp.ne.s32.totalorder %s5116_s22, %s4834_s27  ;;  %s4839_s6 = sshll.u32 %s4974_s29, 4  ;;  %s4840_s6 = int_to_ptr.vmem [resolvable:$false] %s4839_s6 }
  0x49   : > { %s4841_s10 = scalar_lea.vmem %s4840_s6, 4096  ;;  %p4842_p5 = scmp.lt.s32.totalorder %s5116_s22, %s4840_s6 }
  0x4a   : > { %p4837_p11 = pnand %p4835_p12, %p4821_p3  ;;  %p4843_p9 = scmp.lt.s32.totalorder %s4841_s10, %s4834_s27 }
  0x4c   : > { %p4838_p0 = pneg %p4837_p11  ;;  %p4844_p1 = por %p4843_p9, %p4842_p5 }
  0x4e   : > { %p4845_p2 = pnand %p4844_p1, %p4838_p0 }
  0x50   : > { %4848 = shalt.err (!%p4845_p2)
}
  0x51   : > { %s6604_s14 = smov 8   ;;  %s6605_s30 = smov 128  }
  0x52   : > { %4726 = dma.hbm_to_vmem [thread:$0]  (!%p5120_p13), %s5114_s11, 2048, %s5116_s22, %s5131_s2, %s6605_s30, %s6605_s30, %s6604_s14  }
  0x53   : > { %s216_s12 = sand.u32 1, %s4969_s20   ;;  %s4849_s8 = scalar_lea.hbm %s5127_s9, 2048 }
  0x54   : > { %s5166_s26 = scalar_lea.sflag [#allocation6], %s216_s12  ;;  %p4850_p7 = scmp.ne.s32.totalorder %s5127_s9, %s4849_s8 }
  0x55   : > { %s4854_s6 = scalar_lea.hbm %s6465_s1, 4096  ;;  %p4855_p8 = scmp.lt.u32.totalorder %s5127_s9, %s6465_s1 }
  0x56   : > { %p4852_p4 = pnand %p4850_p7, %p4821_p3  ;;  %p4856_p12 = scmp.lt.u32.totalorder %s4854_s6, %s4849_s8 }
  0x57   : > { %p4858_p0 = scmp.lt.u32.totalorder %s4849_s8, %s5127_s9 }
  0x58   : > { %p4853_p6 = pneg %p4852_p4  ;;  %p4857_p11 = por %p4856_p12, %p4855_p8 }
  0x5a   : > { %p4859_p5 = por %p4858_p0, %p4857_p11 }
  0x5c   : > { %p4860_p9 = pnand %p4859_p5, %p4853_p6 }
  0x5e   : > { %4863 = shalt.err (!%p4860_p9)
}
  0x5f   : > { %s4864_s2 = scalar_lea.vmem %s5163_s13, 2048  ;;  %s4975_s11 = smov [#allocation5]  }
  0x60   : > { %p4865_p1 = scmp.ne.s32.totalorder %s5163_s13, %s4864_s2  ;;  %s4869_s22 = sshll.u32 %s4975_s11, 4  ;;  %s4870_s22 = int_to_ptr.vmem [resolvable:$false] %s4869_s22 }
  0x61   : > { %s4871_s0 = scalar_lea.vmem %s4870_s22, 4096  ;;  %p4872_p4 = scmp.lt.s32.totalorder %s5163_s13, %s4870_s22 }
  0x62   : > { %p4867_p2 = pnand %p4865_p1, %p4821_p3  ;;  %p4873_p8 = scmp.lt.s32.totalorder %s4871_s0, %s4864_s2 }
  0x64   : > { %p4868_p7 = pneg %p4867_p2  ;;  %p4874_p12 = por %p4873_p8, %p4872_p4 }
  0x66   : > { %p4875_p11 = pnand %p4874_p12, %p4868_p7 }
  0x68   : > { %4878 = shalt.err (!%p4875_p11)
}
  0x69   : > { %4729 = dma.hbm_to_vmem [thread:$0]  (!%p5120_p13), %s5127_s9, 2048, %s5163_s13, %s5166_s26, %s6605_s30, %s6605_s30, %s6604_s14  }
  0x6a   : > { %p6606_p3 = scmp.ne.s32.totalorder %s6595_s25, 0 }
  0x6c   : > { %239 = sbr.rel (%p6606_p3) target bundleno = 964 (0x3c4), region = 36 }
  0x73   : > { %s5198_s12 = sand.u32 1, %s4953_s16   ;;  %p6607_p6 = scmp.ne.s32.totalorder %s6593_s23, 0 }
  0x74   : > { %s5201_s8 = sshll.u32 %s5198_s12, 7  ;;  %s242_s5 = scalar_lea.sflag [#allocation3], %s5198_s12 }
  0x75   : > { %s5205_s27 = scalar_lea.vmem [#allocation2], %s5201_s8 }
  0x76   : > { %4932 = dma.done.wait (%p6607_p6), %s242_s5, 2048  }
  0x77   : > { %4934 = vsyncadd (%p6607_p6), %s242_s5, 4294965248  ;;  %s250_s25 = sand.u32 1, %s5035_s21   ;;  %s5213_s9 = scalar_lea.vmem [#allocation5], %s5201_s8 }
  0x78   : > { %s251_s13 = scalar_lea.sflag [#allocation6], %s250_s25 }
  0x79   : > { %4936 = dma.done.wait (%p6607_p6), %s251_s13, 2048  }
  0x7a   : > { %4938 = vsyncadd (%p6607_p6), %s251_s13, 4294965248  ;;  %p6608_p13 = scmp.eq.s32.totalorder %s5035_s21, 0 }
  0x7c   : > { %4940 = dma.done.wait (%p6608_p13), [#allocation6], 2048   ;;  %p6609_p0 = pmov %p6608_p13 }
  0x7d   : > { %v306_v0 = vld [vmem:[%s5213_s9] sm:$0xff]  ;;  %v307_v1 = vld [vmem:[%s5213_s9 + $0x8] sm:$0xff]  ;;  %v308_v2 = vld [vmem:[%s5213_s9 + $0x10] sm:$0xff]  ;;  %s6390_s14 = scalar_lea.vmem [#allocation8], %s5201_s8  ;;  %s3108_s30 = sshll.u32 %s4961_s18, 11 }
  0x7e   : > { %4942 = vsyncadd (%p6609_p0), [#allocation6], 4294965248  ;;  %v323_v3 = vand.u32 4294901760, %v306_v0  ;;  %v326_v4 = vand.u32 4294901760, %v307_v1  ;;  %v309_v5 = vld [vmem:[%s5213_s9 + $0x18] sm:$0xff]  ;;  %v329_v6 = vand.u32 4294901760, %v308_v2  ;;  %s6411_s10 = scalar_lea.hbm %s6468_s4, %s3108_s30 }
  0x7f   : > { %v5228_v7 = vld [vmem:[%s5213_s9 + $0x20] sm:$0xff]  ;;  %v5231_v8 = vld [vmem:[%s5213_s9 + $0x28] sm:$0xff]  ;;  %v332_v9 = vand.u32 4294901760, %v309_v5  ;;  %v5240_v14 = vld [vmem:[%s5213_s9 + $0x30] sm:$0xff]  ;;  %s2965_s26 = sshll.u32 %s6390_s14, 4  ;;  %s2950_s18 = scalar_lea.sflag [#allocation4], %s5198_s12  ;;  %s6413_s26 = int_to_ptr.vmem [resolvable:$true] %s2965_s26 }
  0x80   : > { %v5233_v10 = vpack.c.bf16 %v326_v4, %v323_v3  ;;  %v335_v11 = vand.u32 4294901760, %v5228_v7  ;;  %v338_v12 = vand.u32 4294901760, %v5231_v8  ;;  %v5243_v15 = vld [vmem:[%s5213_s9 + $0x38] sm:$0xff]  ;;  %v290_v16 = vld [vmem:[%s5205_s27] sm:$0xff]  ;;  %v291_v17 = vld [vmem:[%s5205_s27 + $0x8] sm:$0xff]  ;;  %v341_v20 = vand.u32 4294901760, %v5240_v14 }
  0x81   : > { %v5237_v13 = vpack.c.bf16 %v332_v9, %v329_v6  ;;  %v5249_v18 = vand.u32 4294901760, %v290_v16  ;;  %v344_v21 = vand.u32 4294901760, %v5243_v15  ;;  %v5261_v22 = vld [vmem:[%s5213_s9 + $0x40] sm:$0xff]  ;;  %v5264_v23 = vld [vmem:[%s5213_s9 + $0x48] sm:$0xff]  ;;  %v5269_v25 = vand.u32 4294901760, %v291_v17  ;;  %v292_v26 = vld [vmem:[%s5205_s27 + $0x10] sm:$0xff] }
  0x82   : > { %6610 = vst [vmem:[#allocation14_spill] sm:$0xff] %v5233_v10  ;;  %4166 = vmatprep.subr.bf16.mxu0 %v5233_v10  ;;  %v5256_v19 = vpack.c.bf16 %v338_v12, %v335_v11  ;;  %v293_v27 = vld [vmem:[%s5205_s27 + $0x18] sm:$0xff]  ;;  %v347_v28 = vand.u32 4294901760, %v5261_v22  ;;  %v350_v31 = vand.u32 4294901760, %v5264_v23  ;;  %v5285_v32 = vld [vmem:[%s5213_s9 + $0x50] sm:$0xff]  ;;  %v5287_v33 = vsub.f32 %v306_v0, %v323_v3  ;;  %v5309_v42 = vld [vmem:[%s5213_s9 + $0x60] sm:$0xff] }
  0x83   : > { %6611 = vst [vmem:[#allocation15_spill] sm:$0xff] %v5237_v13  ;;  %4168 = vmatpush3.bf16.msra.mxu0 %v5233_v10  ;;  %v5267_v24 = vsub.f32 %v290_v16, %v5249_v18  ;;  %v5281_v30 = vpack.c.bf16 %v344_v21, %v341_v20  ;;  %v5289_v34 = vsub.f32 %v307_v1, %v326_v4  ;;  %v5292_v35 = vld [vmem:[%s5213_s9 + $0x58] sm:$0xff]  ;;  %v5300_v38 = vand.u32 4294901760, %v292_v26  ;;  %v5312_v43 = vld [vmem:[%s5213_s9 + $0x68] sm:$0xff]  ;;  %v5323_v47 = vld [vmem:[%s5213_s9 + $0x70] sm:$0xff]  ;;  %s4879_s2 = scalar_lea.vmem %s6413_s26, 2048 }
  0x84   : > { %4170 = vmatprep.subr.bf16.mxu0 %v5237_v13  ;;  %6612 = vst [vmem:[#allocation16_spill] sm:$0xff] %v5256_v19  ;;  %v5298_v37 = vsub.f32 %v291_v17, %v5269_v25  ;;  %v5302_v39 = vand.u32 4294901760, %v293_v27  ;;  %v5304_v40 = vsub.f32 %v308_v2, %v329_v6  ;;  %v6490_v41 = vand.u32 4294901760, %v5285_v32  ;;  %v294_v50 = vld [vmem:[%s5205_s27 + $0x20] sm:$0xff]  ;;  %v295_v51 = vld [vmem:[%s5205_s27 + $0x28] sm:$0xff]  ;;  %v5331_v52 = vld [vmem:[%s5213_s9 + $0x78] sm:$0xff]  ;;  %p4880_p5 = scmp.ne.s32.totalorder %s6413_s26, %s4879_s2 }
  0x85   : > { %6613 = vst [vmem:[#allocation17_spill] sm:$0xff] %v5267_v24  ;;  %v6478_v29 = vand.u32 4294901760, %v5267_v24  ;;  %6614 = vst [vmem:[#allocation18_spill] sm:$0xff] %v5281_v30  ;;  %v5319_v45 = vpack.c.bf16 %v350_v31, %v347_v28  ;;  %v6489_v46 = vand.u32 4294901760, %v5292_v35  ;;  %v6481_v48 = vand.u32 4294901760, %v5287_v33  ;;  %v296_v3 = vld [vmem:[%s5205_s27 + $0x30] sm:$0xff] }
  0x86   : > { %6615 = vst [vmem:[#allocation19_spill] sm:$0xff] %v5298_v37  ;;  %v5326_v49 = vsub.f32 %v309_v5, %v332_v9  ;;  %v6477_v53 = vand.u32 4294901760, %v5298_v37  ;;  %v6480_v54 = vand.u32 4294901760, %v5289_v34  ;;  %v5336_v55 = vsub.f32 %v292_v26, %v5300_v38  ;;  %p4881_p9 = pnand %p4880_p5, %p5099_p10  ;;  %s4976_s11 = smov [#allocation8]  }
  0x87   : > { %4172 = vmatpush3.bf16.msra.mxu0 %v5237_v13  ;;  %v406_v36 = vsub.f32 %v5267_v24, %v6478_v29  ;;  %6616 = vst [vmem:[#allocation20_spill] sm:$0xff] %v5319_v45  ;;  %v5339_v56 = vsub.f32 %v293_v27, %v5302_v39  ;;  %v6488_v57 = vand.u32 4294901760, %v5309_v42  ;;  %v6479_v58 = vand.u32 4294901760, %v5304_v40  ;;  %s4883_s22 = sshll.u32 %s4976_s11, 4  ;;  %s4884_s22 = int_to_ptr.vmem [resolvable:$false] %s4883_s22 }
  0x88   : > { %4174 = vmatprep.subr.bf16.mxu0 %v5256_v19  ;;  %6617 = vst [vmem:[#allocation21_spill] sm:$0xff] %v5336_v55  ;;  %v6487_v59 = vand.u32 4294901760, %v5312_v43  ;;  %v6484_v60 = vand.u32 4294901760, %v5323_v47  ;;  %v5346_v61 = vand.u32 4294901760, %v294_v50  ;;  %v5348_v62 = vand.u32 4294901760, %v295_v51  ;;  %p4882_p1 = pneg %p4881_p9  ;;  %s4885_s0 = scalar_lea.vmem %s4884_s22, 4096 }
  0x89   : > { %v407_v44 = vand.u32 4294901760, %v406_v36  ;;  %6618 = vst [vmem:[#allocation22_spill] sm:$0xff] %v5339_v56  ;;  %v5355_v63 = vpack.c.bf16 %v6489_v46, %v6490_v41  ;;  %v6482_v0 = vand.u32 4294901760, %v5331_v52  ;;  %v567_v1 = vsub.f32 %v5287_v33, %v6481_v48  ;;  %v299_v48 = vld [vmem:[%s5205_s27 + $0x48] sm:$0xff]  ;;  %p4886_p2 = scmp.lt.s32.totalorder %s6413_s26, %s4884_s22  ;;  %p4887_p7 = scmp.lt.s32.totalorder %s4885_s0, %s4879_s2 }
  0x8a   : > { %v6483_v2 = vand.u32 4294901760, %v5326_v49  ;;  %v5366_v4 = vsub.f32 %v5298_v37, %v6477_v53  ;;  %v574_v5 = vsub.f32 %v5289_v34, %v6480_v54  ;;  %v6485_v6 = vand.u32 4294901760, %v5336_v55  ;;  %v297_v53 = vld [vmem:[%s5205_s27 + $0x38] sm:$0xff]  ;;  %v298_v54 = vld [vmem:[%s5205_s27 + $0x40] sm:$0xff] }
  0x8b   : > { %4176 = vmatpush3.bf16.msra.mxu0 %v5256_v19  ;;  %3525 = vmatprep.mubr.f32.mxu0 %v407_v44  ;;  %6619 = vst [vmem:[#allocation23_spill] sm:$0xff] %v5355_v63  ;;  %v6486_v9 = vand.u32 4294901760, %v5339_v56  ;;  %v581_v16 = vsub.f32 %v5304_v40, %v6479_v58  ;;  %v5379_v17 = vsub.f32 %v5228_v7, %v335_v11  ;;  %v5393_v44 = vand.u32 4294901760, %v296_v3  ;;  %p4888_p4 = por %p4887_p7, %p4886_p2 }
  0x8c   : > { %4178 = vmatprep.subr.bf16.mxu0 %v5281_v30  ;;  %v5384_v26 = vsub.f32 %v5231_v8, %v338_v12  ;;  %v5388_v27 = vsub.f32 %v294_v50, %v5346_v61  ;;  %v5391_v36 = vsub.f32 %v295_v51, %v5348_v62  ;;  %v5401_v7 = vpack.c.bf16 %v6487_v59, %v6488_v57 }
  0x8d   : > { %v5407_v8 = vpack.c.bf16 %v6482_v0, %v6484_v60  ;;  %v568_v11 = vand.u32 4294901760, %v567_v1  ;;  %v588_v12 = vsub.f32 %v5326_v49, %v6483_v2  ;;  %v417_v50 = vand.u32 4294901760, %v5366_v4  ;;  %p4889_p8 = pnand %p4888_p4, %p4882_p1 }
  0x8e   : > { %6620 = vst [vmem:[#allocation24_spill] sm:$0xff] %v5388_v27  ;;  %6621 = vst [vmem:[#allocation25_spill] sm:$0xff] %v5391_v36  ;;  %v575_v51 = vand.u32 4294901760, %v574_v5  ;;  %v5416_v29 = vsub.f32 %v5336_v55, %v6485_v6  ;;  %v5421_v58 = vsub.f32 %v5339_v56, %v6486_v9  ;;  %v582_v1 = vand.u32 4294901760, %v581_v16 }
  0x8f   : > { %4180 = vmatpush3.bf16.msra.mxu0 %v5281_v30  ;;  %6622 = vst [vmem:[#allocation26_spill] sm:$0xff] %v5401_v7  ;;  %6623 = vst [vmem:[#allocation27_spill] sm:$0xff] %v5407_v8  ;;  %v6494_v0 = vand.u32 4294901760, %v5379_v17  ;;  %v6492_v2 = vand.u32 4294901760, %v5384_v26  ;;  %v5427_v60 = vand.u32 4294901760, %v297_v53  ;;  %v6491_v4 = vand.u32 4294901760, %v5388_v27 }
  0x90   : > { %4182 = vmatprep.subr.bf16.mxu0 %v5319_v45  ;;  %v6493_v5 = vand.u32 4294901760, %v5391_v36  ;;  %v5433_v6 = vsub.f32 %v296_v3, %v5393_v44  ;;  %v5438_v16 = vsub.f32 %v5240_v14, %v341_v20  ;;  %v589_v9 = vand.u32 4294901760, %v588_v12 }
  0x91   : > { %v5444_v59 = vsub.f32 %v5243_v15, %v344_v21  ;;  %v5446_v57 = vand.u32 4294901760, %v298_v54  ;;  %v5448_v46 = vand.u32 4294901760, %v299_v48  ;;  %v4197_v41 = vpack.c.bf16 %v575_v51, %v568_v11 }
  0x92   : > { %6624 = vst [vmem:[#allocation28_spill] sm:$0xff] %v5433_v6  ;;  %v427_v3 = vand.u32 4294901760, %v5416_v29  ;;  %v5454_v14 = vsub.f32 %v5261_v22, %v347_v28  ;;  %v5459_v20 = vsub.f32 %v5264_v23, %v350_v31  ;;  %v437_v15 = vand.u32 4294901760, %v5421_v58  ;;  %v300_v22 = vld [vmem:[%s5205_s27 + $0x50] sm:$0xff]  ;;  %v301_v31 = vld [vmem:[%s5205_s27 + $0x58] sm:$0xff] }
  0x93   : > { %4184 = vmatpush3.bf16.msra.mxu0 %v5319_v45  ;;  %v595_v21 = vsub.f32 %v5379_v17, %v6494_v0  ;;  %v602_v29 = vsub.f32 %v5384_v26, %v6492_v2  ;;  %v5469_v11 = vsub.f32 %v297_v53, %v5427_v60  ;;  %v446_v23 = vsub.f32 %v5388_v27, %v6491_v4  ;;  %v303_v27 = vld [vmem:[%s5205_s27 + $0x68] sm:$0xff] }
  0x94   : > { %4186 = vmatprep.subr.bf16.mxu0 %v5355_v63  ;;  %v5479_v28 = vsub.f32 %v5391_v36, %v6493_v5  ;;  %v4201_v53 = vpack.c.bf16 %v589_v9, %v582_v1  ;;  %v5486_v51 = vsub.f32 %v298_v54, %v5446_v57  ;;  %v5489_v4 = vsub.f32 %v299_v48, %v5448_v46 }
  0x95   : > { %6625 = vst [vmem:[#allocation29_spill] sm:$0xff] %v5469_v11  ;;  %v5493_v0 = vand.u32 4294901760, %v300_v22  ;;  %v6628_v58 = vand.u32 4294901760, %v5285_v32  ;;  %v596_v1 = vand.u32 4294901760, %v595_v21  ;;  %v603_v12 = vand.u32 4294901760, %v602_v29  ;;  %v302_v29 = vld [vmem:[%s5205_s27 + $0x60] sm:$0xff] }
  0x96   : > { %6626 = vst [vmem:[#allocation30_spill] sm:$0xff] %v5486_v51  ;;  %6627 = vst [vmem:[#allocation31_spill] sm:$0xff] %v5489_v4  ;;  %v447_v5 = vand.u32 4294901760, %v446_v23  ;;  %v457_v2 = vand.u32 4294901760, %v5479_v28  ;;  %v5521_v28 = vand.u32 4294901760, %v301_v31  ;;  %v6633_v54 = vand.u32 4294901760, %v5454_v14 }
  0x97   : > { %4188 = vmatpush3.bf16.msra.mxu0 %v5355_v63  ;;  %v5499_v9 = vsub.f32 %v5285_v32, %v6628_v58  ;;  %v6630_v63 = vand.u32 4294901760, %v5433_v6  ;;  %v6631_v32 = vand.u32 4294901760, %v5438_v16  ;;  %v6632_v58 = vand.u32 4294901760, %v5444_v59 }
  0x98   : > { %4190 = vmatprep.subr.bf16.mxu0 %v5401_v7  ;;  %v5530_v30 = vsub.f32 %v300_v22, %v5493_v0  ;;  %v5537_v19 = vand.u32 4294901760, %v302_v29  ;;  %v6637_v22 = vand.u32 4294901760, %v5309_v42 }
  0x99   : > { %v466_v45 = vsub.f32 %v5433_v6, %v6630_v63  ;;  %v609_v21 = vsub.f32 %v5438_v16, %v6631_v32  ;;  %v623_v63 = vsub.f32 %v5454_v14, %v6633_v54  ;;  %v6636_v6 = vand.u32 4294901760, %v5469_v11 }
  0x9a   : > { %6635 = vst [vmem:[#allocation32_spill] sm:$0xff] %v5530_v30  ;;  %v6644_v37 = vand.u32 4294901760, %v5530_v30 }
  0x9b   : > { %4192 = vmatpush3.bf16.msra.mxu0 %v5401_v7  ;;  %v6629_v7 = vand.u32 4294901760, %v5292_v35  ;;  %v476_v23 = vsub.f32 %v5469_v11, %v6636_v6  ;;  %v467_v54 = vand.u32 4294901760, %v466_v45  ;;  %v6640_v45 = vand.u32 4294901760, %v5489_v4 }
  0x9c   : > { %4194 = vmatprep.subr.bf16.mxu0 %v5407_v8  ;;  %v506_v10 = vsub.f32 %v5530_v30, %v6644_v37  ;;  %v6654_v30 = vand.u32 4294901760, %v5438_v16 }
  0x9d   : > { %v5505_v48 = vsub.f32 %v5292_v35, %v6629_v7  ;;  %v616_v35 = vsub.f32 %v5444_v59, %v6632_v58  ;;  %v4205_v7 = vpack.c.bf16 %v603_v12, %v596_v1  ;;  %v5543_v58 = vsub.f32 %v5309_v42, %v6637_v22  ;;  %v304_v42 = vld [vmem:[%s5205_s27 + $0x70] sm:$0xff] }
  0x9e   : > { %v6639_v1 = vand.u32 4294901760, %v5486_v51  ;;  %v624_v22 = vand.u32 4294901760, %v623_v63 }
  0x9f   : > { %4196 = vmatpush3.bf16.msra.mxu0 %v5407_v8  ;;  %v6634_v8 = vand.u32 4294901760, %v5459_v20  ;;  %v643_v36 = vand.u32 4294901760, %v5505_v48  ;;  %v617_v6 = vand.u32 4294901760, %v616_v35  ;;  %v6641_v35 = vand.u32 4294901760, %v5499_v9 }
  0xa0   : > { %4198 = vmatprep.subr.bf16.mxu0 %v4197_v41 }
  0xa1   : > { %v630_v32 = vsub.f32 %v5459_v20, %v6634_v8  ;;  %v610_v8 = vand.u32 4294901760, %v609_v21  ;;  %v5559_v21 = vsub.f32 %v301_v31, %v5521_v28  ;;  %v650_v31 = vand.u32 4294901760, %v5543_v58 }
  0xa2   : > { %3526 = vmatmul.mubr.f32.vlgmr.msra.gmra.mrb[0].mxu0 %v417_v50  ;;  %v6638_v50 = vand.u32 4294901760, %v5312_v43 }
  0xa3   : > { %4200 = vmatpush3.bf16.msra.mxu0 %v4197_v41  ;;  %3528 = vmatprep.mubr.f32.mxu0 %v427_v3  ;;  %v486_v41 = vsub.f32 %v5486_v51, %v6639_v1  ;;  %v5556_v3 = vsub.f32 %v5489_v4, %v6640_v45  ;;  %v631_v11 = vand.u32 4294901760, %v630_v32  ;;  %v477_v1 = vand.u32 4294901760, %v476_v23 }
  0xa4   : > { %v5548_v12 = vsub.f32 %v5312_v43, %v6638_v50  ;;  %4202 = vmatprep.subr.bf16.mxu0 %v4201_v53  ;;  %v637_v50 = vsub.f32 %v5499_v9, %v6641_v35  ;;  %v644_v51 = vsub.f32 %v5505_v48, %v643_v36  ;;  %v5568_v45 = vsub.f32 %v302_v29, %v5537_v19  ;;  %v305_v43 = vld [vmem:[%s5205_s27 + $0x78] sm:$0xff] }
  0xa5   : > { %v5570_v4 = vand.u32 4294901760, %v303_v27  ;;  %v5574_v32 = vand.u32 4294901760, %v304_v42  ;;  %v6642_v35 = vand.u32 4294901760, %v5323_v47  ;;  %v4209_v23 = vpack.c.bf16 %v617_v6, %v610_v8 }
  0xa6   : > { %3529 = vmatmul.mubr.f32.gmra.mrb[2].mxu0 %v437_v15  ;;  %v657_v63 = vand.u32 4294901760, %v5548_v12  ;;  %v487_v29 = vand.u32 4294901760, %v486_v41  ;;  %v6535_v56 = vand.u32 4294901760, %v5559_v21  ;;  %v497_v13 = vand.u32 4294901760, %v5556_v3 }
  0xa7   : > { %4204 = vmatpush3.bf16.msra.mxu0 %v4201_v53  ;;  %3531 = vmatprep.mubr.f32.mxu0 %v447_v5  ;;  %v5580_v15 = vsub.f32 %v5323_v47, %v6642_v35  ;;  %v6643_v53 = vand.u32 4294901760, %v5331_v52  ;;  %v4213_v55 = vpack.c.bf16 %v631_v11, %v624_v22  ;;  %v638_v24 = vand.u32 4294901760, %v637_v50 }
  0xa8   : > { %4206 = vmatprep.subr.bf16.mxu0 %v4205_v7  ;;  %v645_v47 = vand.u32 4294901760, %v644_v51  ;;  %v5594_v6 = vsub.f32 %v303_v27, %v5570_v4  ;;  %v5596_v41 = vand.u32 4294901760, %v305_v43  ;;  %v658_v11 = vsub.f32 %v5548_v12, %v657_v63 }
  0xa9   : > { %v5586_v5 = vsub.f32 %v5331_v52, %v6643_v53  ;;  %v651_v52 = vsub.f32 %v5543_v58, %v650_v31  ;;  %v5601_v3 = vsub.f32 %v304_v42, %v5574_v32  ;;  %v664_v37 = vand.u32 4294901760, %v5580_v15 }
  0xaa   : > { %3532 = vmatmul.mubr.f32.gmra.mrb[4].mxu0 %v457_v2  ;;  %v6645_v51 = vand.u32 4294901760, %v5287_v33  ;;  %v6646_v27 = vand.u32 4294901760, %v5289_v34  ;;  %v6651_v42 = vand.u32 4294901760, %v5379_v17  ;;  %v6652_v35 = vand.u32 4294901760, %v5384_v26 }
  0xab   : > { %4208 = vmatpush3.bf16.msra.mxu0 %v4205_v7  ;;  %3534 = vmatprep.mubr.f32.mxu0 %v467_v54  ;;  %v671_v2 = vand.u32 4294901760, %v5586_v5  ;;  %v6648_v7 = vand.u32 4294901760, %v5304_v40  ;;  %v6649_v54 = vand.u32 4294901760, %v5326_v49  ;;  %v516_v8 = vsub.f32 %v5559_v21, %v6535_v56 }
  0xac   : > { %4210 = vmatprep.subr.bf16.mxu0 %v4209_v23  ;;  %v5609_v22 = vpack.c.bf16 %v6646_v27, %v6645_v51  ;;  %v5621_v53 = vpack.c.bf16 %v6652_v35, %v6651_v42  ;;  %v6655_v51 = vand.u32 4294901760, %v5444_v59  ;;  %v6550_v35 = vand.u32 4294901760, %v5594_v6 }
  0xad   : > { %v5615_v50 = vpack.c.bf16 %v6649_v54, %v6648_v7  ;;  %v6658_v7 = vand.u32 4294901760, %v5459_v20  ;;  %v5644_v56 = vsub.f32 %v305_v43, %v5596_v41  ;;  %v665_v43 = vsub.f32 %v5580_v15, %v664_v37 }
  0xae   : > { %6647 = vst [vmem:[#allocation33_spill] sm:$0xff] %v5609_v22  ;;  %6653 = vst [vmem:[#allocation35_spill] sm:$0xff] %v5621_v53  ;;  %v5630_v27 = vpack.c.bf16 %v6655_v51, %v6654_v30  ;;  %v6657_v22 = vand.u32 4294901760, %v5454_v14  ;;  %3535 = vmatmul.mubr.f32.gmra.mrb[6].mxu0 %v477_v1  ;;  %v5646_v53 = vpack.c.bf16 %v657_v63, %v650_v31  ;;  %v507_v51 = vand.u32 4294901760, %v506_v10 }
  0xaf   : > { %6650 = vst [vmem:[#allocation34_spill] sm:$0xff] %v5615_v50  ;;  %v6659_v50 = vand.u32 4294901760, %v5499_v9  ;;  %v5648_v30 = vpack.c.bf16 %v671_v2, %v664_v37  ;;  %4212 = vmatpush3.bf16.msra.mxu0 %v4209_v23  ;;  %3537 = vmatprep.mubr.f32.mxu0 %v487_v29  ;;  %v652_v1 = vand.u32 4294901760, %v651_v52  ;;  %v672_v31 = vsub.f32 %v5586_v5, %v671_v2 }
  0xb0   : > { %6656 = vst [vmem:[#allocation36_spill] sm:$0xff] %v5630_v27  ;;  %v5636_v54 = vpack.c.bf16 %v6658_v7, %v6657_v22  ;;  %v4217_v27 = vpack.c.bf16 %v645_v47, %v638_v24  ;;  %v6660_v22 = vand.u32 4294901760, %v5568_v45  ;;  %4214 = vmatprep.subr.bf16.mxu0 %v4213_v55  ;;  %v517_v63 = vand.u32 4294901760, %v516_v8 }
  0xb1   : > { %v5640_v42 = vpack.c.bf16 %v643_v36, %v6659_v50  ;;  %v6549_v36 = vand.u32 4294901760, %v5601_v3  ;;  %v659_v50 = vand.u32 4294901760, %v658_v11  ;;  %v536_v10 = vsub.f32 %v5594_v6, %v6550_v35 }
  0xb2   : > { %v526_v7 = vsub.f32 %v5568_v45, %v6660_v22  ;;  %3538 = vmatmul.mubr.f32.gmra.mrb[8].mxu0 %v497_v13  ;;  %v6548_v24 = vand.u32 4294901760, %v5644_v56  ;;  %v666_v52 = vand.u32 4294901760, %v665_v43  ;;  %v673_v11 = vand.u32 4294901760, %v672_v31 }
  0xb3   : > { %4216 = vmatpush3.bf16.msra.mxu0 %v4213_v55  ;;  %3540 = vmatprep.mubr.f32.mxu0 %v507_v51  ;;  %v546_v29 = vsub.f32 %v5601_v3, %v6549_v36  ;;  %v4221_v47 = vpack.c.bf16 %v659_v50, %v652_v1  ;;  %v537_v13 = vand.u32 4294901760, %v536_v10  ;;  %v4229_v51 = vpack.c.bf16 %v5289_v34, %v5287_v33  ;;  %v6663_v50 = vld [vmem:[#allocation19_spill] sm:$0xff]  ;;  %v6664_v10 = vld [vmem:[#allocation21_spill] sm:$0xff] }
  0xb4   : > { %v527_v23 = vand.u32 4294901760, %v526_v7  ;;  %4218 = vmatprep.subr.bf16.mxu0 %v4217_v27  ;;  %v556_v8 = vsub.f32 %v5644_v56, %v6548_v24  ;;  %v4225_v55 = vpack.c.bf16 %v673_v11, %v666_v52  ;;  %v4237_v22 = vpack.c.bf16 %v5384_v26, %v5379_v17  ;;  %v5698_v17 = vld [vmem:[#allocation7] sm:$0xff]  ;;  %v5700_v26 = vld [vmem:[#allocation7 + $0x8] sm:$0xff] }
  0xb5   : > { %v547_v37 = vand.u32 4294901760, %v546_v29  ;;  %v4241_v33 = vpack.c.bf16 %v5444_v59, %v5438_v16  ;;  %v4245_v34 = vpack.c.bf16 %v5459_v20, %v5454_v14  ;;  %v4257_v59 = vpack.c.bf16 %v5586_v5, %v5580_v15  ;;  %v5702_v16 = vld [vmem:[#allocation7 + $0x10] sm:$0xff]  ;;  %v6661_v14 = vld [vmem:[#allocation17_spill] sm:$0xff]  ;;  %v5712_v15 = vld [vmem:[#allocation7 + $0x28] sm:$0xff] }
  0xb6   : > { %3541 = vmatmul.mubr.f32.gmra.mrb[10].mxu0 %v517_v63  ;;  %v557_v2 = vand.u32 4294901760, %v556_v8  ;;  %v6547_v20 = vand.u32 4294901760, %v5698_v17  ;;  %v6662_v5 = vld [vmem:[#allocation14_spill] sm:$0xff]  ;;  %v6540_v63 = vand.u32 4294901760, %v5712_v15  ;;  %v5735_v29 = vld [vmem:[#allocation7 + $0x38] sm:$0xff]  ;;  %v6683_v24 = vand.u32 4294901760, %v6663_v50 }
  0xb7   : > { %4220 = vmatpush3.bf16.msra.mxu0 %v4217_v27  ;;  %3543 = vmatprep.mubr.f32.mxu0 %v527_v23  ;;  %v4233_v27 = vpack.c.bf16 %v5326_v49, %v5304_v40  ;;  %v4249_v40 = vpack.c.bf16 %v5505_v48, %v5499_v9  ;;  %v4253_v49 = vpack.c.bf16 %v5548_v12, %v5543_v58  ;;  %v6546_v9 = vand.u32 4294901760, %v5700_v26  ;;  %v5707_v48 = vld [vmem:[#allocation7 + $0x18] sm:$0xff]  ;;  %v5710_v12 = vld [vmem:[#allocation7 + $0x20] sm:$0xff]  ;;  %v5733_v23 = vld [vmem:[#allocation7 + $0x30] sm:$0xff] }
  0xb8   : > { %4222 = vmatprep.subr.bf16.mxu0 %v4221_v47  ;;  %v6543_v58 = vand.u32 4294901760, %v5702_v16  ;;  %v6542_v7 = vand.u32 4294901760, %v5707_v48  ;;  %v6541_v31 = vand.u32 4294901760, %v5710_v12  ;;  %v6666_v52 = vld [vmem:[#allocation22_spill] sm:$0xff]  ;;  %v6538_v8 = vand.u32 4294901760, %v5735_v29 }
  0xb9   : > { %v5720_v1 = vpack.c.bf16 %v6546_v9, %v6547_v20  ;;  %v6681_v9 = vand.u32 4294901760, %v6661_v14  ;;  %v6682_v20 = vld [vmem:[#allocation33_spill] sm:$0xff]  ;;  %v6684_v36 = vand.u32 4294901760, %v6664_v10  ;;  %v6685_v35 = vld [vmem:[#allocation34_spill] sm:$0xff] }
  0xba   : > { %3544 = vmatmul.mubr.f32.gmra.mrb[12].mxu0 %v537_v13  ;;  %v5727_v43 = vpack.c.bf16 %v6542_v7, %v6543_v58  ;;  %v5746_v11 = vpack.c.bf16 %v6540_v63, %v6541_v31  ;;  %v6539_v13 = vand.u32 4294901760, %v5733_v23  ;;  %v6675_v63 = vld [vmem:[#allocation20_spill] sm:$0xff]  ;;  %v6676_v31 = vld [vmem:[#allocation31_spill] sm:$0xff] }
  0xbb   : > { %4224 = vmatpush3.bf16.msra.mxu0 %v4221_v47  ;;  %3546 = vmatprep.mubr.f32.mxu0 %v547_v37  ;;  %v6665_v47 = vld [vmem:[#allocation15_spill] sm:$0xff]  ;;  %v6667_v37 = vld [vmem:[#allocation24_spill] sm:$0xff] }
  0xbc   : > { %4226 = vmatprep.subr.bf16.mxu0 %v4225_v55  ;;  %4358 = vmatprep.subr.bf16.mxu1 %v5720_v1  ;;  %v6677_v7 = vld [vmem:[#allocation32_spill] sm:$0xff]  ;;  %v6678_v58 = vld [vmem:[#allocation23_spill] sm:$0xff] }
  0xbd   : > { %4360 = vmatpush3.bf16.msra.mxu1 %v5720_v1 }
  0xbe   : > { %3547 = vmatmul.mubr.f32.gmra.mrb[14].mxu0 %v557_v2  ;;  %4362 = vmatprep.subr.bf16.mxu1 %v5727_v43  ;;  %v5754_v2 = vld [vmem:[#allocation7 + $0x48] sm:$0xff] }
  0xbf   : > { %4228 = vmatpush3.bf16.msra.mxu0 %v4225_v55  ;;  %3581 = vmatprep.mubr.f32.mxu0 %v5249_v18  ;;  %v5752_v55 = vld [vmem:[#allocation7 + $0x40] sm:$0xff] }
  0xc0   : > { %4230 = vmatprep.subr.bf16.mxu0 %v4229_v51 }
  0xc1   : > { %4364 = vmatpush3.bf16.msra.mxu1 %v5727_v43 }
  0xc2   : > { %3582 = vmatmul.mubr.f32.vlgmr.msra.gmra.mrb[0].mxu0 %v5269_v25  ;;  %4366 = vmatprep.subr.bf16.mxu1 %v5746_v11 }
  0xc3   : > { %4232 = vmatpush3.bf16.msra.mxu0 %v4229_v51  ;;  %3584 = vmatprep.mubr.f32.mxu0 %v5300_v38  ;;  %v6668_v51 = vld [vmem:[#allocation16_spill] sm:$0xff] }
  0xc4   : > { %4234 = vmatprep.subr.bf16.mxu0 %v4233_v27 }
  0xc5   : > { %4368 = vmatpush3.bf16.msra.mxu1 %v5746_v11 }
  0xc6   : > { %3585 = vmatmul.mubr.f32.gmra.mrb[2].mxu0 %v5302_v39 }
  0xc7   : > { %4236 = vmatpush3.bf16.msra.mxu0 %v4233_v27  ;;  %3587 = vmatprep.mubr.f32.mxu0 %v5346_v61  ;;  %v6669_v27 = vld [vmem:[#allocation25_spill] sm:$0xff] }
  0xc8   : > { %4238 = vmatprep.subr.bf16.mxu0 %v4237_v22 }
  0xca   : > { %3588 = vmatmul.mubr.f32.gmra.mrb[4].mxu0 %v5348_v62 }
  0xcb   : > { %4240 = vmatpush3.bf16.msra.mxu0 %v4237_v22  ;;  %3590 = vmatprep.mubr.f32.mxu0 %v5393_v44  ;;  %v5764_v22 = vpack.c.bf16 %v6538_v8, %v6539_v13  ;;  %v6674_v13 = vld [vmem:[#allocation30_spill] sm:$0xff] }
  0xcc   : > { %4242 = vmatprep.subr.bf16.mxu0 %v4241_v33 }
  0xcd   : > { %4370 = vmatprep.subr.bf16.mxu1 %v5764_v22 }
  0xce   : > { %3591 = vmatmul.mubr.f32.gmra.mrb[6].mxu0 %v5427_v60  ;;  %4372 = vmatpush3.bf16.msra.mxu1 %v5764_v22 }
  0xcf   : > { %4244 = vmatpush3.bf16.msra.mxu0 %v4241_v33  ;;  %3593 = vmatprep.mubr.f32.mxu0 %v5446_v57  ;;  %v6545_v33 = vand.u32 4294901760, %v5752_v55 }
  0xd0   : > { %4246 = vmatprep.subr.bf16.mxu0 %v4245_v34 }
  0xd2   : > { %3594 = vmatmul.mubr.f32.gmra.mrb[8].mxu0 %v5448_v46 }
  0xd3   : > { %4248 = vmatpush3.bf16.msra.mxu0 %v4245_v34  ;;  %3596 = vmatprep.mubr.f32.mxu0 %v5493_v0  ;;  %v6544_v34 = vand.u32 4294901760, %v5754_v2 }
  0xd4   : > { %4250 = vmatprep.subr.bf16.mxu0 %v4249_v40 }
  0xd5   : > { %v5778_v8 = vpack.c.bf16 %v6544_v34, %v6545_v33  ;;  %v6679_v34 = vld [vmem:[#allocation26_spill] sm:$0xff]  ;;  %v6680_v33 = vld [vmem:[#allocation27_spill] sm:$0xff] }
  0xd6   : > { %3597 = vmatmul.mubr.f32.gmra.mrb[10].mxu0 %v5521_v28 }
  0xd7   : > { %4252 = vmatpush3.bf16.msra.mxu0 %v4249_v40  ;;  %3599 = vmatprep.mubr.f32.mxu0 %v5537_v19  ;;  %v6670_v40 = vld [vmem:[#allocation28_spill] sm:$0xff]  ;;  %6673 = vst [vmem:[#allocation17_spill] sm:$0xff] %v5778_v8 }
  0xd8   : > { %4254 = vmatprep.subr.bf16.mxu0 %v4253_v49  ;;  %4374 = vmatprep.subr.bf16.mxu1 %v5778_v8 }
  0xd9   : > { %4376 = vmatpush3.bf16.msra.mxu1 %v5778_v8  ;;  %v6686_v8 = vand.u32 4294901760, %v6666_v52 }
  0xda   : > { %3600 = vmatmul.mubr.f32.gmra.mrb[12].mxu0 %v5570_v4 }
  0xdb   : > { %4256 = vmatpush3.bf16.msra.mxu0 %v4253_v49  ;;  %3602 = vmatprep.mubr.f32.mxu0 %v5574_v32  ;;  %v6671_v49 = vld [vmem:[#allocation18_spill] sm:$0xff] }
  0xdc   : > { %4258 = vmatprep.subr.bf16.mxu0 %v4257_v59 }
  0xde   : > { %3603 = vmatmul.mubr.f32.gmra.mrb[14].mxu0 %v5596_v41 }
  0xdf   : > { %4260 = vmatpush3.bf16.msra.mxu0 %v4257_v59  ;;  %3637 = vmatprep.mubr.f32.mxu0 %v6661_v14  ;;  %v6672_v59 = vld [vmem:[#allocation29_spill] sm:$0xff]  ;;  %v6687_v14 = vand.u32 4294901760, %v6667_v37 }
  0xe0   : > { %4262 = vmatprep.subr.bf16.mxu0 %v6662_v5 }
  0xe2   : > { %3638 = vmatmul.mubr.f32.vlgmr.msra.gmra.mrb[0].mxu0 %v6663_v50  ;;  %v6689_v50 = vand.u32 4294901760, %v6669_v27 }
  0xe3   : > { %4264 = vmatpush3.bf16.msra.mxu0 %v6662_v5  ;;  %3640 = vmatprep.mubr.f32.mxu0 %v6664_v10  ;;  %v6694_v10 = vand.u32 4294901760, %v6676_v31 }
  0xe4   : > { %4266 = vmatprep.subr.bf16.mxu0 %v6665_v47 }
  0xe6   : > { %3641 = vmatmul.mubr.f32.gmra.mrb[2].mxu0 %v6666_v52  ;;  %v6695_v52 = vand.u32 4294901760, %v6677_v7 }
  0xe7   : > { %4268 = vmatpush3.bf16.msra.mxu0 %v6665_v47  ;;  %3643 = vmatprep.mubr.f32.mxu0 %v6667_v37 }
  0xe8   : > { %4270 = vmatprep.subr.bf16.mxu0 %v6668_v51 }
  0xea   : > { %3644 = vmatmul.mubr.f32.gmra.mrb[4].mxu0 %v6669_v27 }
  0xeb   : > { %4272 = vmatpush3.bf16.msra.mxu0 %v6668_v51  ;;  %3646 = vmatprep.mubr.f32.mxu0 %v6670_v40 }
  0xec   : > { %4274 = vmatprep.subr.bf16.mxu0 %v6671_v49 }
  0xee   : > { %3647 = vmatmul.mubr.f32.gmra.mrb[6].mxu0 %v6672_v59 }
  0xef   : > { %4276 = vmatpush3.bf16.msra.mxu0 %v6671_v49  ;;  %3649 = vmatprep.mubr.f32.mxu0 %v6674_v13 }
  0xf0   : > { %4278 = vmatprep.subr.bf16.mxu0 %v6675_v63 }
  0xf2   : > { %3650 = vmatmul.mubr.f32.gmra.mrb[8].mxu0 %v6676_v31  ;;  %v6698_v31 = vand.u32 4294901760, %v5594_v6 }
  0xf3   : > { %4280 = vmatpush3.bf16.msra.mxu0 %v6675_v63  ;;  %3652 = vmatprep.mubr.f32.mxu0 %v6677_v7 }
  0xf4   : > { %4282 = vmatprep.subr.bf16.mxu0 %v6678_v58 }
  0xf6   : > { %3653 = vmatmul.mubr.f32.gmra.mrb[10].mxu0 %v5559_v21 }
  0xf7   : > { %4284 = vmatpush3.bf16.msra.mxu0 %v6678_v58  ;;  %3655 = vmatprep.mubr.f32.mxu0 %v5568_v45 }
  0xf8   : > { %4286 = vmatprep.subr.bf16.mxu0 %v6679_v34 }
  0xfa   : > { %3656 = vmatmul.mubr.f32.gmra.mrb[12].mxu0 %v5594_v6 }
  0xfb   : > { %4288 = vmatpush3.bf16.msra.mxu0 %v6679_v34  ;;  %3658 = vmatprep.mubr.f32.mxu0 %v5601_v3 }
  0xfc   : > { %4290 = vmatprep.subr.bf16.mxu0 %v6680_v33 }
  0xfe   : > { %3659 = vmatmul.mubr.f32.gmra.mrb[14].mxu0 %v5644_v56 }
  0xff   : > { %4292 = vmatpush3.bf16.msra.mxu0 %v6680_v33  ;;  %3693 = vmatprep.mubr.f32.mxu0 %v6681_v9  ;;  %v6688_v9 = vld [vmem:[#allocation35_spill] sm:$0xff] }
 0x100   : > { %4294 = vmatprep.subr.bf16.mxu0 %v6682_v20 }
 0x102   : > { %3694 = vmatmul.mubr.f32.vlgmr.msra.gmra.mrb[0].mxu0 %v6683_v24  ;;  %v6690_v24 = vand.u32 4294901760, %v6670_v40 }
 0x103   : > { %4296 = vmatpush3.bf16.msra.mxu0 %v6682_v20  ;;  %3696 = vmatprep.mubr.f32.mxu0 %v6684_v36  ;;  %v6691_v36 = vld [vmem:[#allocation36_spill] sm:$0xff]  ;;  %v6692_v20 = vand.u32 4294901760, %v6672_v59 }
 0x104   : > { %4298 = vmatprep.subr.bf16.mxu0 %v6685_v35 }
 0x106   : > { %3697 = vmatmul.mubr.f32.gmra.mrb[2].mxu0 %v6686_v8  ;;  %v6696_v8 = vand.u32 4294901760, %v5559_v21  ;;  %v6700_v21 = vand.u32 4294901760, %v5644_v56 }
 0x107   : > { %4300 = vmatpush3.bf16.msra.mxu0 %v6685_v35  ;;  %3699 = vmatprep.mubr.f32.mxu0 %v6687_v14  ;;  %v6693_v35 = vand.u32 4294901760, %v6674_v13  ;;  %v6697_v13 = vand.u32 4294901760, %v5568_v45  ;;  %v1623_v45 = vld [vmem:[#allocation7 + $0x78] sm:$0xff] }
 0x108   : > { %4302 = vmatprep.subr.bf16.mxu0 %v6688_v9  ;;  %v1670_v6 = vand.u32 4294901760, %v1623_v45 }
 0x10a   : > { %3700 = vmatmul.mubr.f32.gmra.mrb[4].mxu0 %v6689_v50 }
 0x10b   : > { %4304 = vmatpush3.bf16.msra.mxu0 %v6688_v9  ;;  %3702 = vmatprep.mubr.f32.mxu0 %v6690_v24 }
 0x10c   : > { %4306 = vmatprep.subr.bf16.mxu0 %v6691_v36 }
 0x10e   : > { %3703 = vmatmul.mubr.f32.gmra.mrb[6].mxu0 %v6692_v20 }
 0x10f   : > { %4308 = vmatpush3.bf16.msra.mxu0 %v6691_v36  ;;  %3705 = vmatprep.mubr.f32.mxu0 %v6693_v35  ;;  %v5957_v36 = vsub.f32 %v1623_v45, %v1670_v6  ;;  %v6714_v45 = vand.u32 4294901760, %v5710_v12 }
 0x110   : > { %4310 = vmatprep.subr.bf16.mxu0 %v5636_v54 }
 0x111   : > { %6711 = vst [vmem:[#allocation28_spill] sm:$0xff] %v5957_v36 }
 0x112   : > { %3706 = vmatmul.mubr.f32.gmra.mrb[8].mxu0 %v6694_v10 }
 0x113   : > { %4312 = vmatpush3.bf16.msra.mxu0 %v5636_v54  ;;  %3708 = vmatprep.mubr.f32.mxu0 %v6695_v52  ;;  %v6699_v54 = vand.u32 4294901760, %v5601_v3  ;;  %v6553_v52 = vand.u32 4294901760, %v5957_v36 }
 0x114   : > { %4314 = vmatprep.subr.bf16.mxu0 %v5640_v42 }
 0x116   : > { %3709 = vmatmul.mubr.f32.gmra.mrb[10].mxu0 %v6696_v8 }
 0x117   : > { %4316 = vmatpush3.bf16.msra.mxu0 %v5640_v42  ;;  %3711 = vmatprep.mubr.f32.mxu0 %v6697_v13 }
 0x118   : > { %4318 = vmatprep.subr.bf16.mxu0 %v5646_v53 }
 0x11a   : > { %3712 = vmatmul.mubr.f32.gmra.mrb[12].mxu0 %v6698_v31  ;;  %v1974_v31 = vsub.f32 %v5957_v36, %v6553_v52  ;;  %v6719_v52 = vand.u32 4294901760, %v5754_v2 }
 0x11b   : > { %4320 = vmatpush3.bf16.msra.mxu0 %v5646_v53  ;;  %3714 = vmatprep.mubr.f32.mxu0 %v6699_v54 }
 0x11c   : > { %4322 = vmatprep.subr.bf16.mxu0 %v5648_v30 }
 0x11e   : > { %3715 = vmatmul.mubr.f32.gmra.mrb[14].mxu0 %v6700_v21  ;;  %v1975_v21 = vand.u32 4294901760, %v1974_v31 }
 0x11f   : > { %4324 = vmatpush3.bf16.msra.mxu0 %v5648_v30  ;;  %3749 = vmatprep.mubr.f32.mxu0 %v5249_v18 }
 0x120   : > { %4326 = vmatprep.subr.bf16.mxu0 %v6662_v5 }
 0x122   : > { %3750 = vmatmul.mubr.f32.vlgmr.msra.gmra.mrb[0].mxu0 %v5269_v25 }
 0x123   : > { %4328 = vmatpush3.bf16.msra.mxu0 %v6662_v5  ;;  %3752 = vmatprep.mubr.f32.mxu0 %v5300_v38 }
 0x124   : > { %4330 = vmatprep.subr.bf16.mxu0 %v6665_v47 }
 0x126   : > { %3753 = vmatmul.mubr.f32.gmra.mrb[2].mxu0 %v5302_v39 }
 0x127   : > { %4332 = vmatpush3.bf16.msra.mxu0 %v6665_v47  ;;  %3755 = vmatprep.mubr.f32.mxu0 %v5346_v61 }
 0x128   : > { %4334 = vmatprep.subr.bf16.mxu0 %v6668_v51 }
 0x12a   : > { %3756 = vmatmul.mubr.f32.gmra.mrb[4].mxu0 %v5348_v62 }
 0x12b   : > { %4336 = vmatpush3.bf16.msra.mxu0 %v6668_v51  ;;  %3758 = vmatprep.mubr.f32.mxu0 %v5393_v44 }
 0x12c   : > { %4338 = vmatprep.subr.bf16.mxu0 %v6671_v49 }
 0x12e   : > { %3759 = vmatmul.mubr.f32.gmra.mrb[6].mxu0 %v5427_v60 }
 0x12f   : > { %4340 = vmatpush3.bf16.msra.mxu0 %v6671_v49  ;;  %3761 = vmatprep.mubr.f32.mxu0 %v5446_v57 }
 0x130   : > { %4342 = vmatprep.subr.bf16.mxu0 %v6675_v63 }
 0x132   : > { %3762 = vmatmul.mubr.f32.gmra.mrb[8].mxu0 %v5448_v46 }
 0x133   : > { %4344 = vmatpush3.bf16.msra.mxu0 %v6675_v63  ;;  %3764 = vmatprep.mubr.f32.mxu0 %v5493_v0 }
 0x134   : > { %4346 = vmatprep.subr.bf16.mxu0 %v6678_v58 }
 0x136   : > { %3765 = vmatmul.mubr.f32.gmra.mrb[10].mxu0 %v5521_v28 }
 0x137   : > { %4348 = vmatpush3.bf16.msra.mxu0 %v6678_v58  ;;  %3767 = vmatprep.mubr.f32.mxu0 %v5537_v19 }
 0x138   : > { %4350 = vmatprep.subr.bf16.mxu0 %v6679_v34 }
 0x13a   : > { %3768 = vmatmul.mubr.f32.gmra.mrb[12].mxu0 %v5570_v4 }
 0x13b   : > { %4352 = vmatpush3.bf16.msra.mxu0 %v6679_v34  ;;  %3770 = vmatprep.mubr.f32.mxu0 %v5574_v32 }
 0x13c   : > { %4354 = vmatprep.subr.bf16.mxu0 %v6680_v33 }
 0x13e   : > { %3771 = vmatmul.mubr.f32.gmra.mrb[14].mxu0 %v5596_v41 }
 0x13f   : > { %4356 = vmatpush3.bf16.msra.mxu0 %v6680_v33  ;;  %3805 = vmatprep.mubr.f32.mxu0 %v5249_v18  ;;  %v1618_v18 = vld [vmem:[#allocation7 + $0x50] sm:$0xff] }
 0x142   : > { %3806 = vmatmul.mubr.f32.vlgmr.msra.gmra.mrb[0].mxu0 %v5269_v25  ;;  %v1619_v25 = vld [vmem:[#allocation7 + $0x58] sm:$0xff] }
 0x143   : > { %3808 = vmatprep.mubr.f32.mxu0 %v5300_v38  ;;  %v1655_v38 = vand.u32 4294901760, %v1618_v18 }
 0x145   : > { %v5929_v5 = vsub.f32 %v1618_v18, %v1655_v38 }
 0x146   : > { %3809 = vmatmul.mubr.f32.gmra.mrb[2].mxu0 %v5302_v39  ;;  %v1658_v39 = vand.u32 4294901760, %v1619_v25 }
 0x147   : > { %3811 = vmatprep.mubr.f32.mxu0 %v5346_v61  ;;  %6706 = vst [vmem:[#allocation15_spill] sm:$0xff] %v5929_v5  ;;  %v6558_v63 = vand.u32 4294901760, %v5929_v5 }
 0x148   : > { %v5896_v56 = vpack.c.bf16 %v1658_v39, %v1655_v38  ;;  %v5931_v7 = vsub.f32 %v1619_v25, %v1658_v39 }
 0x149   : > { %v1939_v37 = vsub.f32 %v5929_v5, %v6558_v63 }
 0x14a   : > { %3812 = vmatmul.mubr.f32.gmra.mrb[4].mxu0 %v5348_v62  ;;  %4378 = vmatprep.subr.bf16.mxu1 %v5896_v56  ;;  %v6701_v62 = vand.u32 4294901760, %v5698_v17  ;;  %6707 = vst [vmem:[#allocation22_spill] sm:$0xff] %v5931_v7  ;;  %v6557_v47 = vand.u32 4294901760, %v5931_v7  ;;  %v5977_v38 = vpack.c.bf16 %v5931_v7, %v5929_v5 }
 0x14b   : > { %3814 = vmatprep.mubr.f32.mxu0 %v5393_v44  ;;  %4380 = vmatpush3.bf16.msra.mxu1 %v5896_v56  ;;  %v6703_v44 = vand.u32 4294901760, %v5700_v26  ;;  %v1940_v34 = vand.u32 4294901760, %v1939_v37 }
 0x14c   : > { %v1946_v51 = vsub.f32 %v5931_v7, %v6557_v47 }
 0x14e   : > { %3815 = vmatmul.mubr.f32.gmra.mrb[6].mxu0 %v5427_v60  ;;  %v1947_v40 = vand.u32 4294901760, %v1946_v51  ;;  %v6716_v51 = vand.u32 4294901760, %v5733_v23 }
 0x14f   : > { %3817 = vmatprep.mubr.f32.mxu0 %v5446_v57  ;;  %v1620_v57 = vld [vmem:[#allocation7 + $0x60] sm:$0xff] }
 0x150   : > { %v1661_v60 = vand.u32 4294901760, %v1620_v57  ;;  %v5947_v14 = vpack.c.bf16 %v1947_v40, %v1940_v34  ;;  %v6717_v34 = vand.u32 4294901760, %v5735_v29 }
 0x152   : > { %3818 = vmatmul.mubr.f32.gmra.mrb[8].mxu0 %v5448_v46  ;;  %v1621_v46 = vld [vmem:[#allocation7 + $0x68] sm:$0xff]  ;;  %v5941_v27 = vsub.f32 %v1620_v57, %v1661_v60  ;;  %v6027_v40 = vsub.f32 %v5735_v29, %v6717_v34 }
 0x153   : > { %3820 = vmatprep.mubr.f32.mxu0 %v5493_v0  ;;  %v1664_v61 = vand.u32 4294901760, %v1621_v46  ;;  %v5905_v0 = vsub.f32 %v5698_v17, %v6701_v62 }
 0x154   : > { %6708 = vst [vmem:[#allocation24_spill] sm:$0xff] %v5941_v27  ;;  %v6556_v49 = vand.u32 4294901760, %v5941_v27 }
 0x155   : > { %6702 = vst [vmem:[#allocation14_spill] sm:$0xff] %v5905_v0  ;;  %v5943_v33 = vsub.f32 %v1621_v46, %v1664_v61  ;;  %v6712_v46 = vand.u32 4294901760, %v5702_v16 }
 0x156   : > { %3821 = vmatmul.mubr.f32.gmra.mrb[10].mxu0 %v5521_v28  ;;  %v1622_v28 = vld [vmem:[#allocation7 + $0x70] sm:$0xff]  ;;  %v1953_v9 = vsub.f32 %v5941_v27, %v6556_v49 }
 0x157   : > { %3823 = vmatprep.mubr.f32.mxu0 %v5537_v19  ;;  %v5900_v19 = vpack.c.bf16 %v1664_v61, %v1661_v60  ;;  %6709 = vst [vmem:[#allocation16_spill] sm:$0xff] %v5943_v33  ;;  %v6555_v59 = vand.u32 4294901760, %v5943_v33  ;;  %v5981_v39 = vpack.c.bf16 %v5943_v33, %v5941_v27  ;;  %v5990_v60 = vsub.f32 %v5702_v16, %v6712_v46 }
 0x158   : > { %v1954_v20 = vand.u32 4294901760, %v1953_v9  ;;  %v6713_v61 = vand.u32 4294901760, %v5707_v48 }
 0x159   : > { %4382 = vmatprep.subr.bf16.mxu1 %v5900_v19  ;;  %v1960_v50 = vsub.f32 %v5943_v33, %v6555_v59 }
 0x15a   : > { %3824 = vmatmul.mubr.f32.gmra.mrb[12].mxu0 %v5570_v4  ;;  %v5910_v4 = vsub.f32 %v5700_v26, %v6703_v44  ;;  %4384 = vmatpush3.bf16.msra.mxu1 %v5900_v19  ;;  %v5995_v62 = vsub.f32 %v5707_v48, %v6713_v61  ;;  %v6565_v44 = vand.u32 4294901760, %v5990_v60 }
 0x15b   : > { %3826 = vmatprep.mubr.f32.mxu0 %v5574_v32  ;;  %v1667_v32 = vand.u32 4294901760, %v1622_v28  ;;  %v1961_v35 = vand.u32 4294901760, %v1960_v50 }
 0x15c   : > { %6704 = vst [vmem:[#allocation19_spill] sm:$0xff] %v5910_v4  ;;  %v6567_v3 = vand.u32 4294901760, %v5910_v4  ;;  %v5973_v25 = vpack.c.bf16 %v5910_v4, %v5905_v0  ;;  %v1883_v16 = vsub.f32 %v5990_v60, %v6565_v44 }
 0x15d   : > { %v5916_v53 = vpack.c.bf16 %v1670_v6, %v1667_v32  ;;  %v5955_v24 = vsub.f32 %v1622_v28, %v1667_v32  ;;  %v5961_v8 = vpack.c.bf16 %v1961_v35, %v1954_v20  ;;  %v6563_v28 = vand.u32 4294901760, %v5995_v62 }
 0x15e   : > { %3827 = vmatmul.mubr.f32.gmra.mrb[14].mxu0 %v5596_v41  ;;  %v6569_v41 = vand.u32 4294901760, %v5905_v0  ;;  %v1876_v30 = vsub.f32 %v5910_v4, %v6567_v3  ;;  %v6002_v32 = vsub.f32 %v5710_v12, %v6714_v45  ;;  %v6715_v6 = vand.u32 4294901760, %v5712_v15 }
 0x15f   : > { %6705 = vst [vmem:[#allocation21_spill] sm:$0xff] %v5916_v53  ;;  %4386 = vmatprep.subr.bf16.mxu1 %v5916_v53  ;;  %6710 = vst [vmem:[#allocation25_spill] sm:$0xff] %v5955_v24  ;;  %v6554_v10 = vand.u32 4294901760, %v5955_v24  ;;  %v5985_v57 = vpack.c.bf16 %v5957_v36, %v5955_v24  ;;  %v1890_v48 = vsub.f32 %v5995_v62, %v6563_v28  ;;  %v1884_v20 = vand.u32 4294901760, %v1883_v16 }
 0x160   : > { %v1869_v42 = vsub.f32 %v5905_v0, %v6569_v41  ;;  %v1877_v26 = vand.u32 4294901760, %v1876_v30  ;;  %4388 = vmatpush3.bf16.msra.mxu1 %v5916_v53  ;;  %v6564_v45 = vand.u32 4294901760, %v6027_v40 }
 0x161   : > { %v1967_v13 = vsub.f32 %v5955_v24, %v6554_v10  ;;  %v1891_v35 = vand.u32 4294901760, %v1890_v48  ;;  %v6718_v48 = vand.u32 4294901760, %v5752_v55  ;;  %v6065_v10 = vsub.f32 %v5754_v2, %v6719_v52 }
 0x162   : > { %v1870_v17 = vand.u32 4294901760, %v1869_v42  ;;  %v6007_v42 = vsub.f32 %v5712_v15, %v6715_v6  ;;  %v6022_v15 = vsub.f32 %v5733_v23, %v6716_v51  ;;  %v1918_v52 = vsub.f32 %v6027_v40, %v6564_v45 }
 0x163   : > { %v1968_v54 = vand.u32 4294901760, %v1967_v13  ;;  %v4393_v34 = vpack.c.bf16 %v1891_v35, %v1884_v20 }
 0x164   : > { %v5926_v58 = vpack.c.bf16 %v1877_v26, %v1870_v17  ;;  %v6560_v17 = vand.u32 4294901760, %v6002_v32  ;;  %v6559_v26 = vand.u32 4294901760, %v6007_v42  ;;  %v6562_v61 = vand.u32 4294901760, %v6022_v15 }
 0x165   : > { %v5969_v18 = vpack.c.bf16 %v1975_v21, %v1968_v54 }
 0x166   : > { %4390 = vmatprep.subr.bf16.mxu1 %v5926_v58  ;;  %v1897_v23 = vsub.f32 %v6002_v32, %v6560_v17  ;;  %v1904_v29 = vsub.f32 %v6007_v42, %v6559_v26  ;;  %v1911_v2 = vsub.f32 %v6022_v15, %v6562_v61 }
 0x168   : > { %v1912_v3 = vand.u32 4294901760, %v1911_v2  ;;  %v6720_v2 = vand.u32 4294901760, %v6065_v10 }
 0x215   : > { %v3807_v30 = vpop.f32.mrb[0].mxu0 }
 0x216   : > { %v6017_v12 = vand.u32 4294901760, %v3807_v30  ;;  %v1514_v37 = vpop.f32.mrb[1].mxu0 }
 0x217   : > { %v6029_v9 = vand.u32 4294901760, %v1514_v37 }
 0x218   : > { %v6032_v50 = vsub.f32 %v3807_v30, %v6017_v12  ;;  %v6054_v30 = vsub.f32 %v5752_v55, %v6718_v48  ;;  %v1905_v48 = vand.u32 4294901760, %v1904_v29 }
 0x219   : > { %v6035_v13 = vsub.f32 %v1514_v37, %v6029_v9  ;;  %v3810_v31 = vpop.f32.mrb[2].mxu0 }
 0x21a   : > { %v6561_v54 = vand.u32 4294901760, %v6032_v50  ;;  %v6044_v21 = vand.u32 4294901760, %v3810_v31  ;;  %v1526_v46 = vpop.f32.mrb[3].mxu0 }
 0x21b   : > { %v6048_v6 = vand.u32 4294901760, %v1526_v46  ;;  %v6566_v16 = vand.u32 4294901760, %v6035_v13 }
 0x21c   : > { %v6057_v37 = vsub.f32 %v3810_v31, %v6044_v21  ;;  %v1718_v51 = vsub.f32 %v6032_v50, %v6561_v54  ;;  %v1898_v31 = vand.u32 4294901760, %v1897_v23  ;;  %v6570_v23 = vand.u32 4294901760, %v6054_v30 }
 0x21d   : > { %v6068_v59 = vsub.f32 %v1526_v46, %v6048_v6  ;;  %v3813_v49 = vpop.f32.mrb[4].mxu0  ;;  %v1708_v55 = vsub.f32 %v6035_v13, %v6566_v16 }
 0x21e   : > { %v6568_v47 = vand.u32 4294901760, %v6057_v37  ;;  %v6074_v63 = vand.u32 4294901760, %v3813_v49  ;;  %v1538_v20 = vpop.f32.mrb[5].mxu0  ;;  %v1719_v17 = vand.u32 4294901760, %v1718_v51  ;;  %v4397_v44 = vpack.c.bf16 %v1905_v48, %v1898_v31 }
 0x21f   : > { %v6571_v35 = vand.u32 4294901760, %v6068_v59  ;;  %v6083_v46 = vand.u32 4294901760, %v1538_v20  ;;  %v1709_v26 = vand.u32 4294901760, %v1708_v55 }
 0x220   : > { %v6087_v29 = vsub.f32 %v3813_v49, %v6074_v63  ;;  %v1738_v54 = vsub.f32 %v6057_v37, %v6568_v47  ;;  %v1919_v47 = vand.u32 4294901760, %v1918_v52  ;;  %v1932_v52 = vsub.f32 %v6065_v10, %v6720_v2 }
 0x221   : > { %v6094_v28 = vsub.f32 %v1538_v20, %v6083_v46  ;;  %v3816_v45 = vpop.f32.mrb[6].mxu0  ;;  %3861 = vmatprep.mubr.f32.mxu1 %v1709_v26  ;;  %v1728_v55 = vsub.f32 %v6068_v59, %v6571_v35  ;;  %v1925_v20 = vsub.f32 %v6054_v30, %v6570_v23 }
 0x222   : > { %v6572_v49 = vand.u32 4294901760, %v6087_v29  ;;  %v6100_v16 = vand.u32 4294901760, %v3816_v45  ;;  %v1550_v51 = vpop.f32.mrb[7].mxu0  ;;  %3862 = vmatmul.mubr.f32.vlgmr.msra.gmra.mrb[0].mxu1 %v1719_v17  ;;  %v1739_v48 = vand.u32 4294901760, %v1738_v54  ;;  %v1933_v27 = vand.u32 4294901760, %v1932_v52 }
 0x223   : > { %v6576_v41 = vand.u32 4294901760, %v6094_v28  ;;  %v6103_v61 = vand.u32 4294901760, %v1550_v51  ;;  %4392 = vmatpush3.bf16.msra.mxu1 %v5926_v58  ;;  %v1729_v26 = vand.u32 4294901760, %v1728_v55  ;;  %v1926_v2 = vand.u32 4294901760, %v1925_v20 }
 0x224   : > { %v6110_v31 = vsub.f32 %v3816_v45, %v6100_v16  ;;  %4394 = vmatprep.subr.bf16.mxu1 %v4393_v34  ;;  %v1758_v17 = vsub.f32 %v6087_v29, %v6572_v49  ;;  %v4401_v49 = vpack.c.bf16 %v1919_v47, %v1912_v3 }
 0x225   : > { %v6119_v58 = vsub.f32 %v1550_v51, %v6103_v61  ;;  %v3819_v55 = vpop.f32.mrb[8].mxu0  ;;  %3864 = vmatprep.mubr.f32.mxu1 %v1729_v26  ;;  %v1748_v45 = vsub.f32 %v6094_v28, %v6576_v41 }
 0x226   : > { %v6578_v54 = vand.u32 4294901760, %v6110_v31  ;;  %v6125_v23 = vand.u32 4294901760, %v3819_v55  ;;  %v1562_v35 = vpop.f32.mrb[9].mxu0  ;;  %3865 = vmatmul.mubr.f32.gmra.mrb[2].mxu1 %v1739_v48  ;;  %v1759_v33 = vand.u32 4294901760, %v1758_v17 }
 0x227   : > { %v6579_v36 = vand.u32 4294901760, %v6119_v58  ;;  %v6128_v24 = vand.u32 4294901760, %v1562_v35  ;;  %4396 = vmatpush3.bf16.msra.mxu1 %v4393_v34  ;;  %v1749_v51 = vand.u32 4294901760, %v1748_v45 }
 0x228   : > { %v6131_v26 = vsub.f32 %v3819_v55, %v6125_v23  ;;  %4398 = vmatprep.subr.bf16.mxu1 %v4397_v44  ;;  %v1778_v41 = vsub.f32 %v6110_v31, %v6578_v54 }
 0x229   : > { %v6137_v48 = vsub.f32 %v1562_v35, %v6128_v24  ;;  %v3822_v3 = vpop.f32.mrb[10].mxu0  ;;  %3867 = vmatprep.mubr.f32.mxu1 %v1749_v51  ;;  %v1768_v47 = vsub.f32 %v6119_v58, %v6579_v36  ;;  %v4405_v36 = vpack.c.bf16 %v1933_v27, %v1926_v2 }
 0x22a   : > { %v6583_v34 = vand.u32 4294901760, %v6131_v26  ;;  %v6143_v20 = vand.u32 4294901760, %v3822_v3  ;;  %v1574_v17 = vpop.f32.mrb[11].mxu0  ;;  %3868 = vmatmul.mubr.f32.gmra.mrb[4].mxu1 %v1759_v33  ;;  %v1779_v51 = vand.u32 4294901760, %v1778_v41 }
 0x22b   : > { %v6584_v55 = vand.u32 4294901760, %v6137_v48  ;;  %v6146_v45 = vand.u32 4294901760, %v1574_v17  ;;  %4400 = vmatpush3.bf16.msra.mxu1 %v4397_v44  ;;  %v1769_v52 = vand.u32 4294901760, %v1768_v47 }
 0x22c   : > { %v6149_v35 = vsub.f32 %v3822_v3, %v6143_v20  ;;  %4402 = vmatprep.subr.bf16.mxu1 %v4401_v49  ;;  %v1798_v54 = vsub.f32 %v6131_v26, %v6583_v34 }
 0x22d   : > { %v6155_v7 = vsub.f32 %v1574_v17, %v6146_v45  ;;  %v3825_v33 = vpop.f32.mrb[12].mxu0  ;;  %3870 = vmatprep.mubr.f32.mxu1 %v1769_v52  ;;  %v1788_v44 = vsub.f32 %v6137_v48, %v6584_v55 }
 0x22e   : > { %v6586_v47 = vand.u32 4294901760, %v6149_v35  ;;  %v6161_v3 = vand.u32 4294901760, %v3825_v33  ;;  %v1586_v41 = vpop.f32.mrb[13].mxu0  ;;  %3871 = vmatmul.mubr.f32.gmra.mrb[6].mxu1 %v1779_v51  ;;  %v1799_v17 = vand.u32 4294901760, %v1798_v54 }
 0x22f   : > { %v6587_v5 = vand.u32 4294901760, %v6155_v7  ;;  %v6164_v4 = vand.u32 4294901760, %v1586_v41  ;;  %4404 = vmatpush3.bf16.msra.mxu1 %v4401_v49  ;;  %v1789_v27 = vand.u32 4294901760, %v1788_v44 }
 0x230   : > { %v6167_v2 = vsub.f32 %v3825_v33, %v6161_v3  ;;  %4406 = vmatprep.subr.bf16.mxu1 %v4405_v36  ;;  %v1818_v52 = vsub.f32 %v6149_v35, %v6586_v47 }
 0x231   : > { %v6173_v34 = vsub.f32 %v1586_v41, %v6164_v4  ;;  %v3828_v55 = vpop.f32.mrb[14].mxu0  ;;  %3873 = vmatprep.mubr.f32.mxu1 %v1789_v27  ;;  %v1808_v51 = vsub.f32 %v6155_v7, %v6587_v5 }
 0x232   : > { %v6590_v49 = vand.u32 4294901760, %v6167_v2  ;;  %v6179_v44 = vand.u32 4294901760, %v3828_v55  ;;  %v1598_v33 = vpop.f32.mrb[15].mxu0  ;;  %3874 = vmatmul.mubr.f32.gmra.mrb[8].mxu1 %v1799_v17  ;;  %v1819_v27 = vand.u32 4294901760, %v1818_v52 }
 0x233   : > { %v1827_v54 = vand.u32 4294901760, %v6173_v34  ;;  %v6182_v0 = vand.u32 4294901760, %v1598_v33  ;;  %4408 = vmatpush3.bf16.msra.mxu1 %v4405_v36  ;;  %v1809_v47 = vand.u32 4294901760, %v1808_v51 }
 0x234   : > { %v6185_v41 = vsub.f32 %v3828_v55, %v6179_v44  ;;  %4410 = vmatprep.subr.bf16.mxu1 %v5947_v14  ;;  %v1838_v5 = vsub.f32 %v6167_v2, %v6590_v49 }
 0x235   : > { %v6192_v53 = vsub.f32 %v1598_v33, %v6182_v0  ;;  %3876 = vmatprep.mubr.f32.mxu1 %v1809_v47  ;;  %v1828_v17 = vsub.f32 %v6173_v34, %v1827_v54 }
 0x236   : > { %v1857_v36 = vand.u32 4294901760, %v6185_v41  ;;  %3877 = vmatmul.mubr.f32.gmra.mrb[10].mxu1 %v1819_v27  ;;  %v1839_v51 = vand.u32 4294901760, %v1838_v5  ;;  %v4425_v5 = vpack.c.bf16 %v5995_v62, %v5990_v60 }
 0x237   : > { %v1847_v55 = vand.u32 4294901760, %v6192_v53  ;;  %4412 = vmatpush3.bf16.msra.mxu1 %v5947_v14  ;;  %v1829_v52 = vand.u32 4294901760, %v1828_v17  ;;  %v4429_v14 = vpack.c.bf16 %v6007_v42, %v6002_v32 }
 0x238   : > { %4414 = vmatprep.subr.bf16.mxu1 %v5961_v8  ;;  %v1858_v33 = vsub.f32 %v6185_v41, %v1857_v36 }
 0x239   : > { %3879 = vmatprep.mubr.f32.mxu1 %v1829_v52  ;;  %v1848_v47 = vsub.f32 %v6192_v53, %v1847_v55 }
 0x23a   : > { %3880 = vmatmul.mubr.f32.gmra.mrb[12].mxu1 %v1839_v51  ;;  %v1859_v49 = vand.u32 4294901760, %v1858_v33  ;;  %v6727_v51 = vand.u32 4294901760, %v6035_v13  ;;  %v6728_v33 = vand.u32 4294901760, %v5990_v60  ;;  %v6735_v60 = vand.u32 4294901760, %v6094_v28 }
 0x23b   : > { %4416 = vmatpush3.bf16.msra.mxu1 %v5961_v8  ;;  %v1849_v27 = vand.u32 4294901760, %v1848_v47  ;;  %v4433_v8 = vpack.c.bf16 %v6027_v40, %v6022_v15  ;;  %v6729_v47 = vand.u32 4294901760, %v5995_v62  ;;  %v6736_v62 = vand.u32 4294901760, %v6022_v15 }
 0x23c   : > { %4418 = vmatprep.subr.bf16.mxu1 %v5969_v18  ;;  %v6743_v15 = vand.u32 4294901760, %v6137_v48 }
 0x23d   : > { %3882 = vmatprep.mubr.f32.mxu1 %v1849_v27  ;;  %v4489_v27 = vpack.c.bf16 %v6729_v47, %v6728_v33  ;;  %v6752_v33 = vld [vmem:[#allocation16_spill] sm:$0xff] }
 0x23e   : > { %3883 = vmatmul.mubr.f32.gmra.mrb[14].mxu1 %v1859_v49  ;;  %v6725_v49 = vld [vmem:[#allocation19_spill] sm:$0xff] }
 0x23f   : > { %4420 = vmatpush3.bf16.msra.mxu1 %v5969_v18  ;;  %3917 = vmatprep.mubr.f32.mxu1 %v6029_v9  ;;  %v4437_v18 = vpack.c.bf16 %v6065_v10, %v6054_v30  ;;  %v6726_v17 = vand.u32 4294901760, %v6725_v49  ;;  %v6742_v49 = vand.u32 4294901760, %v6110_v31 }
 0x240   : > { %4422 = vmatprep.subr.bf16.mxu1 %v5973_v25 }
 0x242   : > { %3918 = vmatmul.mubr.f32.vlgmr.msra.gmra.mrb[0].mxu1 %v6017_v12 }
 0x243   : > { %3920 = vmatprep.mubr.f32.mxu1 %v6048_v6  ;;  %4424 = vmatpush3.bf16.msra.mxu1 %v5973_v25  ;;  %v6721_v25 = vld [vmem:[#allocation17_spill] sm:$0xff] }
 0x244   : > { %4426 = vmatprep.subr.bf16.mxu1 %v4425_v5 }
 0x246   : > { %3921 = vmatmul.mubr.f32.gmra.mrb[2].mxu1 %v6044_v21 }
 0x247   : > { %3923 = vmatprep.mubr.f32.mxu1 %v6083_v46  ;;  %4428 = vmatpush3.bf16.msra.mxu1 %v4425_v5  ;;  %v6730_v5 = vand.u32 4294901760, %v6032_v50 }
 0x248   : > { %4430 = vmatprep.subr.bf16.mxu1 %v4429_v14 }
 0x24a   : > { %3924 = vmatmul.mubr.f32.gmra.mrb[4].mxu1 %v6074_v63 }
 0x24b   : > { %3926 = vmatprep.mubr.f32.mxu1 %v6103_v61  ;;  %4432 = vmatpush3.bf16.msra.mxu1 %v4429_v14  ;;  %v6731_v14 = vand.u32 4294901760, %v6068_v59 }
 0x24c   : > { %4434 = vmatprep.subr.bf16.mxu1 %v4433_v8 }
 0x24e   : > { %3927 = vmatmul.mubr.f32.gmra.mrb[6].mxu1 %v6100_v16 }
 0x24f   : > { %3929 = vmatprep.mubr.f32.mxu1 %v6128_v24  ;;  %4436 = vmatpush3.bf16.msra.mxu1 %v4433_v8  ;;  %v6732_v8 = vand.u32 4294901760, %v6002_v32  ;;  %v6739_v32 = vand.u32 4294901760, %v6119_v58 }
 0x250   : > { %4438 = vmatprep.subr.bf16.mxu1 %v4437_v18 }
 0x252   : > { %3930 = vmatmul.mubr.f32.gmra.mrb[8].mxu1 %v6125_v23 }
 0x253   : > { %3932 = vmatprep.mubr.f32.mxu1 %v6146_v45  ;;  %4440 = vmatpush3.bf16.msra.mxu1 %v4437_v18  ;;  %v6733_v18 = vand.u32 4294901760, %v6007_v42  ;;  %v6740_v42 = vand.u32 4294901760, %v6054_v30  ;;  %v6749_v30 = vand.u32 4294901760, %v6155_v7 }
 0x254   : > { %4442 = vmatprep.subr.bf16.mxu1 %v5977_v38 }
 0x256   : > { %3933 = vmatmul.mubr.f32.gmra.mrb[10].mxu1 %v6143_v20 }
 0x257   : > { %3935 = vmatprep.mubr.f32.mxu1 %v6164_v4  ;;  %4444 = vmatpush3.bf16.msra.mxu1 %v5977_v38  ;;  %v6722_v38 = vld [vmem:[#allocation21_spill] sm:$0xff] }
 0x258   : > { %4446 = vmatprep.subr.bf16.mxu1 %v5981_v39 }
 0x25a   : > { %3936 = vmatmul.mubr.f32.gmra.mrb[12].mxu1 %v6161_v3 }
 0x25b   : > { %3938 = vmatprep.mubr.f32.mxu1 %v6182_v0  ;;  %4448 = vmatpush3.bf16.msra.mxu1 %v5981_v39  ;;  %v6723_v39 = vld [vmem:[#allocation14_spill] sm:$0xff] }
 0x25c   : > { %4450 = vmatprep.subr.bf16.mxu1 %v5985_v57 }
 0x25e   : > { %3939 = vmatmul.mubr.f32.gmra.mrb[14].mxu1 %v6179_v44 }
 0x25f   : > { %4452 = vmatpush3.bf16.msra.mxu1 %v5985_v57  ;;  %3973 = vmatprep.mubr.f32.mxu1 %v6035_v13  ;;  %v6724_v57 = vand.u32 4294901760, %v6723_v39  ;;  %v4493_v13 = vpack.c.bf16 %v6733_v18, %v6732_v8  ;;  %v6734_v39 = vand.u32 4294901760, %v6057_v37  ;;  %v6759_v18 = vand.u32 4294901760, %v6167_v2 }
 0x260   : > { %4454 = vmatprep.subr.bf16.mxu1 %v5720_v1 }
 0x261   : > { %v4485_v52 = vpack.c.bf16 %v6726_v17, %v6724_v57  ;;  %v6738_v57 = vand.u32 4294901760, %v6087_v29  ;;  %v6746_v17 = vld [vmem:[#allocation22_spill] sm:$0xff] }
 0x262   : > { %3974 = vmatmul.mubr.f32.vlgmr.msra.gmra.mrb[0].mxu1 %v6032_v50 }
 0x263   : > { %3976 = vmatprep.mubr.f32.mxu1 %v6068_v59  ;;  %4456 = vmatpush3.bf16.msra.mxu1 %v5720_v1  ;;  %v6737_v59 = vand.u32 4294901760, %v6027_v40  ;;  %v6744_v40 = vld [vmem:[#allocation15_spill] sm:$0xff] }
 0x264   : > { %4458 = vmatprep.subr.bf16.mxu1 %v5727_v43 }
 0x265   : > { %v4497_v50 = vpack.c.bf16 %v6737_v59, %v6736_v62 }
 0x266   : > { %3977 = vmatmul.mubr.f32.gmra.mrb[2].mxu1 %v6057_v37 }
 0x267   : > { %3979 = vmatprep.mubr.f32.mxu1 %v6094_v28  ;;  %4460 = vmatpush3.bf16.msra.mxu1 %v5727_v43  ;;  %v6741_v28 = vand.u32 4294901760, %v6065_v10  ;;  %v6750_v10 = vld [vmem:[#allocation24_spill] sm:$0xff] }
 0x268   : > { %4462 = vmatprep.subr.bf16.mxu1 %v5746_v11 }
 0x269   : > { %v4501_v37 = vpack.c.bf16 %v6741_v28, %v6740_v42 }
 0x26a   : > { %3980 = vmatmul.mubr.f32.gmra.mrb[4].mxu1 %v6087_v29  ;;  %v6745_v29 = vand.u32 4294901760, %v6744_v40 }
 0x26b   : > { %3982 = vmatprep.mubr.f32.mxu1 %v6119_v58  ;;  %4464 = vmatpush3.bf16.msra.mxu1 %v5746_v11  ;;  %v6747_v58 = vand.u32 4294901760, %v6746_v17 }
 0x26c   : > { %4466 = vmatprep.subr.bf16.mxu1 %v5764_v22 }
 0x26e   : > { %3983 = vmatmul.mubr.f32.gmra.mrb[6].mxu1 %v6110_v31  ;;  %v6751_v31 = vand.u32 4294901760, %v6750_v10 }
 0x26f   : > { %3985 = vmatprep.mubr.f32.mxu1 %v6137_v48  ;;  %4468 = vmatpush3.bf16.msra.mxu1 %v5764_v22  ;;  %v6753_v48 = vand.u32 4294901760, %v6752_v33 }
 0x270   : > { %4470 = vmatprep.subr.bf16.mxu1 %v6721_v25 }
 0x271   : > { %v4509_v47 = vpack.c.bf16 %v6753_v48, %v6751_v31 }
 0x272   : > { %3986 = vmatmul.mubr.f32.gmra.mrb[8].mxu1 %v6131_v26 }
 0x273   : > { %3988 = vmatprep.mubr.f32.mxu1 %v6155_v7  ;;  %4472 = vmatpush3.bf16.msra.mxu1 %v6721_v25 }
 0x274   : > { %4474 = vmatprep.subr.bf16.mxu1 %v5896_v56 }
 0x276   : > { %3989 = vmatmul.mubr.f32.gmra.mrb[10].mxu1 %v6149_v35 }
 0x277   : > { %3991 = vmatprep.mubr.f32.mxu1 %v6173_v34  ;;  %4476 = vmatpush3.bf16.msra.mxu1 %v5896_v56 }
 0x278   : > { %4478 = vmatprep.subr.bf16.mxu1 %v5900_v19 }
 0x27a   : > { %3992 = vmatmul.mubr.f32.gmra.mrb[12].mxu1 %v6167_v2 }
 0x27b   : > { %3994 = vmatprep.mubr.f32.mxu1 %v6192_v53  ;;  %4480 = vmatpush3.bf16.msra.mxu1 %v5900_v19 }
 0x27c   : > { %4482 = vmatprep.subr.bf16.mxu1 %v6722_v38 }
 0x27e   : > { %3995 = vmatmul.mubr.f32.gmra.mrb[14].mxu1 %v6185_v41 }
 0x27f   : > { %4484 = vmatpush3.bf16.msra.mxu1 %v6722_v38  ;;  %4029 = vmatprep.mubr.f32.mxu1 %v6727_v51  ;;  %v6748_v51 = vand.u32 4294901760, %v6131_v26  ;;  %v6755_v26 = vld [vmem:[#allocation25_spill] sm:$0xff] }
 0x280   : > { %4486 = vmatprep.subr.bf16.mxu1 %v4485_v52 }
 0x282   : > { %4030 = vmatmul.mubr.f32.vlgmr.msra.gmra.mrb[0].mxu1 %v6730_v5  ;;  %v6756_v5 = vand.u32 4294901760, %v6755_v26 }
 0x283   : > { %4032 = vmatprep.mubr.f32.mxu1 %v6731_v14  ;;  %4488 = vmatpush3.bf16.msra.mxu1 %v4485_v52  ;;  %v4505_v52 = vpack.c.bf16 %v6747_v58, %v6745_v29  ;;  %v6757_v14 = vld [vmem:[#allocation28_spill] sm:$0xff] }
 0x284   : > { %4490 = vmatprep.subr.bf16.mxu1 %v4489_v27  ;;  %v6758_v7 = vand.u32 4294901760, %v6757_v14 }
 0x286   : > { %4033 = vmatmul.mubr.f32.gmra.mrb[2].mxu1 %v6734_v39  ;;  %v4513_v8 = vpack.c.bf16 %v6758_v7, %v6756_v5 }
 0x287   : > { %4035 = vmatprep.mubr.f32.mxu1 %v6735_v60  ;;  %4492 = vmatpush3.bf16.msra.mxu1 %v4489_v27  ;;  %v6754_v27 = vand.u32 4294901760, %v6149_v35 }
 0x288   : > { %4494 = vmatprep.subr.bf16.mxu1 %v4493_v13 }
 0x28a   : > { %4036 = vmatmul.mubr.f32.gmra.mrb[4].mxu1 %v6738_v57 }
 0x28b   : > { %4038 = vmatprep.mubr.f32.mxu1 %v6739_v32  ;;  %4496 = vmatpush3.bf16.msra.mxu1 %v4493_v13 }
 0x28c   : > { %4498 = vmatprep.subr.bf16.mxu1 %v4497_v50 }
 0x28e   : > { %4039 = vmatmul.mubr.f32.gmra.mrb[6].mxu1 %v6742_v49 }
 0x28f   : > { %4041 = vmatprep.mubr.f32.mxu1 %v6743_v15  ;;  %4500 = vmatpush3.bf16.msra.mxu1 %v4497_v50 }
 0x290   : > { %4502 = vmatprep.subr.bf16.mxu1 %v4501_v37 }
 0x292   : > { %4042 = vmatmul.mubr.f32.gmra.mrb[8].mxu1 %v6748_v51 }
 0x293   : > { %4044 = vmatprep.mubr.f32.mxu1 %v6749_v30  ;;  %4504 = vmatpush3.bf16.msra.mxu1 %v4501_v37 }
 0x294   : > { %4506 = vmatprep.subr.bf16.mxu1 %v4505_v52 }
 0x296   : > { %4045 = vmatmul.mubr.f32.gmra.mrb[10].mxu1 %v6754_v27 }
 0x297   : > { %4047 = vmatprep.mubr.f32.mxu1 %v1827_v54  ;;  %4508 = vmatpush3.bf16.msra.mxu1 %v4505_v52 }
 0x298   : > { %4510 = vmatprep.subr.bf16.mxu1 %v4509_v47 }
 0x29a   : > { %4048 = vmatmul.mubr.f32.gmra.mrb[12].mxu1 %v6759_v18 }
 0x29b   : > { %4050 = vmatprep.mubr.f32.mxu1 %v1847_v55  ;;  %4512 = vmatpush3.bf16.msra.mxu1 %v4509_v47 }
 0x29c   : > { %4514 = vmatprep.subr.bf16.mxu1 %v4513_v8 }
 0x29e   : > { %4051 = vmatmul.mubr.f32.gmra.mrb[14].mxu1 %v1857_v36 }
 0x29f   : > { %4516 = vmatpush3.bf16.msra.mxu1 %v4513_v8  ;;  %4085 = vmatprep.mubr.f32.mxu1 %v6029_v9 }
 0x2a0   : > { %4518 = vmatprep.subr.bf16.mxu1 %v5720_v1 }
 0x2a2   : > { %4086 = vmatmul.mubr.f32.vlgmr.msra.gmra.mrb[0].mxu1 %v6017_v12 }
 0x2a3   : > { %4088 = vmatprep.mubr.f32.mxu1 %v6048_v6  ;;  %4520 = vmatpush3.bf16.msra.mxu1 %v5720_v1  ;;  %v3100_v1 = vld [vmem:[%s6467_s3] ss:$0 sm:$0xff] }
 0x2a4   : > { %4522 = vmatprep.subr.bf16.mxu1 %v5727_v43 }
 0x2a6   : > { %4089 = vmatmul.mubr.f32.gmra.mrb[2].mxu1 %v6044_v21 }
 0x2a7   : > { %4091 = vmatprep.mubr.f32.mxu1 %v6083_v46  ;;  %4524 = vmatpush3.bf16.msra.mxu1 %v5727_v43 }
 0x2a8   : > { %4526 = vmatprep.subr.bf16.mxu1 %v5746_v11 }
 0x2aa   : > { %4092 = vmatmul.mubr.f32.gmra.mrb[4].mxu1 %v6074_v63 }
 0x2ab   : > { %4094 = vmatprep.mubr.f32.mxu1 %v6103_v61  ;;  %4528 = vmatpush3.bf16.msra.mxu1 %v5746_v11 }
 0x2ac   : > { %4530 = vmatprep.subr.bf16.mxu1 %v5764_v22 }
 0x2ae   : > { %4095 = vmatmul.mubr.f32.gmra.mrb[6].mxu1 %v6100_v16 }
 0x2af   : > { %4097 = vmatprep.mubr.f32.mxu1 %v6128_v24  ;;  %4532 = vmatpush3.bf16.msra.mxu1 %v5764_v22 }
 0x2b0   : > { %4534 = vmatprep.subr.bf16.mxu1 %v6721_v25 }
 0x2b2   : > { %4098 = vmatmul.mubr.f32.gmra.mrb[8].mxu1 %v6125_v23 }
 0x2b3   : > { %4100 = vmatprep.mubr.f32.mxu1 %v6146_v45  ;;  %4536 = vmatpush3.bf16.msra.mxu1 %v6721_v25 }
 0x2b4   : > { %4538 = vmatprep.subr.bf16.mxu1 %v5896_v56 }
 0x2b6   : > { %4101 = vmatmul.mubr.f32.gmra.mrb[10].mxu1 %v6143_v20 }
 0x2b7   : > { %4103 = vmatprep.mubr.f32.mxu1 %v6164_v4  ;;  %4540 = vmatpush3.bf16.msra.mxu1 %v5896_v56 }
 0x2b8   : > { %4542 = vmatprep.subr.bf16.mxu1 %v5900_v19 }
 0x2ba   : > { %4104 = vmatmul.mubr.f32.gmra.mrb[12].mxu1 %v6161_v3 }
 0x2bb   : > { %4106 = vmatprep.mubr.f32.mxu1 %v6182_v0  ;;  %4544 = vmatpush3.bf16.msra.mxu1 %v5900_v19 }
 0x2bc   : > { %4546 = vmatprep.subr.bf16.mxu1 %v6722_v38 }
 0x2be   : > { %4107 = vmatmul.mubr.f32.gmra.mrb[14].mxu1 %v6179_v44 }
 0x2bf   : > { %4548 = vmatpush3.bf16.msra.mxu1 %v6722_v38  ;;  %4141 = vmatprep.mubr.f32.mxu1 %v6029_v9 }
 0x2c2   : > { %4142 = vmatmul.mubr.f32.vlgmr.msra.gmra.mrb[0].mxu1 %v6017_v12 }
 0x2c3   : > { %4144 = vmatprep.mubr.f32.mxu1 %v6048_v6 }
 0x2c6   : > { %4145 = vmatmul.mubr.f32.gmra.mrb[2].mxu1 %v6044_v21 }
 0x2c7   : > { %4147 = vmatprep.mubr.f32.mxu1 %v6083_v46 }
 0x2ca   : > { %4148 = vmatmul.mubr.f32.gmra.mrb[4].mxu1 %v6074_v63 }
 0x2cb   : > { %4150 = vmatprep.mubr.f32.mxu1 %v6103_v61 }
 0x2ce   : > { %4151 = vmatmul.mubr.f32.gmra.mrb[6].mxu1 %v6100_v16 }
 0x2cf   : > { %4153 = vmatprep.mubr.f32.mxu1 %v6128_v24 }
 0x2d2   : > { %4154 = vmatmul.mubr.f32.gmra.mrb[8].mxu1 %v6125_v23 }
 0x2d3   : > { %4156 = vmatprep.mubr.f32.mxu1 %v6146_v45 }
 0x2d6   : > { %4157 = vmatmul.mubr.f32.gmra.mrb[10].mxu1 %v6143_v20 }
 0x2d7   : > { %4159 = vmatprep.mubr.f32.mxu1 %v6164_v4 }
 0x2da   : > { %4160 = vmatmul.mubr.f32.gmra.mrb[12].mxu1 %v6161_v3 }
 0x2db   : > { %4162 = vmatprep.mubr.f32.mxu1 %v6182_v0 }
 0x2de   : > { %4163 = vmatmul.mubr.f32.gmra.mrb[14].mxu1 %v6179_v44 }
 0x395   : > { %v4143_v43 = vpop.f32.mrb[0].mxu1 }
 0x396   : > { %v2918_v11 = vadd.f32 %v4143_v43, %v3100_v1  ;;  %v2816_v22 = vpop.f32.mrb[1].mxu1 }
 0x397   : > { %v2917_v56 = vadd.f32 %v3100_v1, %v2816_v22 }
 0x398   : > { %2934 = vst [vmem:[%s6390_s14 + $0x8] sm:$0xff] %v2918_v11 }
 0x399   : > { %2933 = vst [vmem:[%s6390_s14] sm:$0xff] %v2917_v56  ;;  %v4146_v19 = vpop.f32.mrb[2].mxu1 }
 0x39a   : > { %v2920_v0 = vadd.f32 %v4146_v19, %v3100_v1  ;;  %v2828_v4 = vpop.f32.mrb[3].mxu1 }
 0x39b   : > { %v2919_v53 = vadd.f32 %v3100_v1, %v2828_v4 }
 0x39c   : > { %2936 = vst [vmem:[%s6390_s14 + $0x18] sm:$0xff] %v2920_v0 }
 0x39d   : > { %2935 = vst [vmem:[%s6390_s14 + $0x10] sm:$0xff] %v2919_v53  ;;  %v4149_v63 = vpop.f32.mrb[4].mxu1 }
 0x39e   : > { %v2922_v24 = vadd.f32 %v4149_v63, %v3100_v1  ;;  %v2840_v12 = vpop.f32.mrb[5].mxu1 }
 0x39f   : > { %v2921_v9 = vadd.f32 %v3100_v1, %v2840_v12 }
 0x3a0   : > { %2938 = vst [vmem:[%s6390_s14 + $0x28] sm:$0xff] %v2922_v24 }
 0x3a1   : > { %2937 = vst [vmem:[%s6390_s14 + $0x20] sm:$0xff] %v2921_v9  ;;  %v4152_v21 = vpop.f32.mrb[6].mxu1 }
 0x3a2   : > { %v2924_v61 = vadd.f32 %v4152_v21, %v3100_v1  ;;  %v2852_v6 = vpop.f32.mrb[7].mxu1 }
 0x3a3   : > { %v2923_v16 = vadd.f32 %v3100_v1, %v2852_v6 }
 0x3a4   : > { %2940 = vst [vmem:[%s6390_s14 + $0x38] sm:$0xff] %v2924_v61 }
 0x3a5   : > { %2939 = vst [vmem:[%s6390_s14 + $0x30] sm:$0xff] %v2923_v16  ;;  %v4155_v46 = vpop.f32.mrb[8].mxu1 }
 0x3a6   : > { %v2926_v23 = vadd.f32 %v4155_v46, %v3100_v1  ;;  %v2864_v34 = vpop.f32.mrb[9].mxu1 }
 0x3a7   : > { %v2925_v20 = vadd.f32 %v3100_v1, %v2864_v34 }
 0x3a8   : > { %2942 = vst [vmem:[%s6390_s14 + $0x48] sm:$0xff] %v2926_v23 }
 0x3a9   : > { %2941 = vst [vmem:[%s6390_s14 + $0x40] sm:$0xff] %v2925_v20  ;;  %v4158_v45 = vpop.f32.mrb[10].mxu1 }
 0x3aa   : > { %v2928_v35 = vadd.f32 %v4158_v45, %v3100_v1  ;;  %v2876_v3 = vpop.f32.mrb[11].mxu1 }
 0x3ab   : > { %v2927_v2 = vadd.f32 %v3100_v1, %v2876_v3 }
 0x3ac   : > { %2944 = vst [vmem:[%s6390_s14 + $0x58] sm:$0xff] %v2928_v35 }
 0x3ad   : > { %2943 = vst [vmem:[%s6390_s14 + $0x50] sm:$0xff] %v2927_v2  ;;  %v4161_v44 = vpop.f32.mrb[12].mxu1 }
 0x3ae   : > { %v2930_v54 = vadd.f32 %v4161_v44, %v3100_v1  ;;  %v2888_v41 = vpop.f32.mrb[13].mxu1 }
 0x3af   : > { %v2929_v36 = vadd.f32 %v3100_v1, %v2888_v41 }
 0x3b0   : > { %2946 = vst [vmem:[%s6390_s14 + $0x68] sm:$0xff] %v2930_v54 }
 0x3b1   : > { %2945 = vst [vmem:[%s6390_s14 + $0x60] sm:$0xff] %v2929_v36  ;;  %v4164_v55 = vpop.f32.mrb[14].mxu1 }
 0x3b2   : > { %v2932_v25 = vadd.f32 %v4164_v55, %v3100_v1  ;;  %v2900_v38 = vpop.f32.mrb[15].mxu1 }
 0x3b3   : > { %v2931_v13 = vadd.f32 %v3100_v1, %v2900_v38 }
 0x3b4   : > { %2948 = vst [vmem:[%s6390_s14 + $0x78] sm:$0xff] %v2932_v25 }
 0x3b5   : > { %2947 = vst [vmem:[%s6390_s14 + $0x70] sm:$0xff] %v2931_v13 }
 0x3b6   : > { %4892 = shalt.err (!%p4889_p8)
}
 0x3b7   : > { %s4893_s8 = scalar_lea.hbm %s6411_s10, 2048  ;;  %s4897_s25 = scalar_lea.hbm %s6468_s4, 4096 }
 0x3b8   : > { %p4894_p12 = scmp.ne.s32.totalorder %s6411_s10, %s4893_s8  ;;  %p4898_p6 = scmp.lt.u32.totalorder %s6411_s10, %s6468_s4 }
 0x3b9   : > { %p4899_p13 = scmp.lt.u32.totalorder %s4897_s25, %s4893_s8  ;;  %p4901_p5 = scmp.lt.u32.totalorder %s4893_s8, %s6411_s10 }
 0x3ba   : > { %p4895_p11 = pnand %p4894_p12, %p5099_p10 }
 0x3bb   : > { %p4900_p0 = por %p4899_p13, %p4898_p6 }
 0x3bc   : > { %p4896_p3 = pneg %p4895_p11 }
 0x3bd   : > { %p4902_p9 = por %p4901_p5, %p4900_p0 }
 0x3bf   : > { %p4903_p1 = pnand %p4902_p9, %p4896_p3 }
 0x3c1   : > { %4906 = shalt.err (!%p4903_p1)
}
 0x3c2   : > { %s4977_s21 = smov 128   ;;  %s4978_s23 = smov 8  }
 0x3c3   : > { %4717 = dma.vmem_to_hbm [thread:$0]  (%p5099_p10), %s6413_s26, 2048, %s6411_s10, %s2950_s18, %s4977_s21, %s4977_s21, %s4978_s23  }
 0x3c4 PF: > { %s2980_s14 = sand.u32 1, %s4949_s15   ;;  %p6760_p2 = scmp.ne.s32.totalorder %s6594_s24, 0 }
 0x3c5   : > { %p6761_p7 = scmp.ge.s32.totalorder %s4969_s20, 2  ;;  %s2981_s30 = scalar_lea.sflag [#allocation4], %s2980_s14 }
 0x3c7   : > { %p4731_p4 = pnand %p6761_p7, %p6760_p2 }
 0x3c9   : > { %4944 = dma.done.wait (!%p4731_p4), %s2981_s30, 2048  }
 0x3ca   : > { %4946 = vsyncadd (!%p4731_p4), %s2981_s30, 4294965248  ;;  %s23_s20 = sadd.s32 1, %s4969_s20   ;;  %s6762_s28 = sld [smem:[#allocation13_spill]] }
 0x3cb   : > { %p20_p8 = scmp.ge.s32.totalorder %s23_s20, 4   ;;  %s6763_s15 = smov %s4953_s16 }
 0x3cc   : > { %s6764_s16 = smov %s4957_s17  ;;  %s6765_s17 = smov %s5108_s7 }
 0x3cd   : > { %s6766_s18 = smov %s4965_s19  ;;  %22 = sbr.rel (!%p20_p8) target bundleno = 11 (0xb), region = 98 }
 0x3d0   : > { %s6767_s19 = smov %s6762_s28 }
 0x3d4   :  { %2986 = vsyncpa [#allocation3], 1 }
 0x3d5   :  { %2988 = vsyncpa [#allocation3 + $0x1], 1 }
 0x3d6   :  { %2989 = vsyncpa [#allocation6], 1 }
 0x3d7   :  { %2991 = vsyncpa [#allocation6 + $0x1], 1 }
 0x3d8   :  { %2992 = vsyncpa [#allocation4], 1 }
 0x3d9   :  { %2994 = vsyncpa [#allocation4 + $0x1], 1 }

// kernel: tpu_custom_call.1
= control target key start
LH: loop header
LB: loop body
LE: loop exit
PB: predicated region body
PF: predicated region fallthrough
CT: control target
= control target key end

     0   :  { %s1691_s0 = inlined_call_operand.hbm [shape: f32[2,128,128], index: 0, kind: input, shape index: {}]   ;;  %s1692_s1 = inlined_call_operand.hbm [shape: f32[2,128,128], index: 1, kind: input, shape index: {}]   ;;  %s1693_s2 = inlined_call_operand.hbm [shape: f32[128,128], index: 2, kind: input, shape index: {}]   ;;  %s1694_s3 = inlined_call_operand.vmem [shape: f32[1,128], index: 3, kind: input, shape index: {}]   ;;  %s1695_s4 = inlined_call_operand.hbm [shape: f32[2,128,128], index: 4, kind: output, shape index: {}]  }
   0x1   :  { %1704 = sst [smem:[#allocation14_spill]] %s1691_s0 }
   0x2   :  { %1705 = sst [smem:[#allocation15_spill]] %s1693_s2 }
   0x3   :  { %9 = vsyncpa [#allocation3], 0 }
   0x4   :  { %11 = vsyncpa [#allocation3 + $0x1], 0 }
   0x5   :  { %12 = vsyncpa [#allocation6], 0 }
   0x6   :  { %14 = vsyncpa [#allocation6 + $0x1], 0 }
   0x7   :  { %15 = vsyncpa [#allocation4], 0 }
   0x8   :  { %17 = vsyncpa [#allocation4 + $0x1], 0  ;;  %s1362_s15 = smov 0   ;;  %s1364_s16 = smov 0  }
   0x9   :  { %s1366_s17 = smov 0   ;;  %s1368_s18 = smov 0  }
   0xa   :  { %s1370_s19 = smov 0   ;;  %s1372_s20 = smov 0  }
   0xb LB: > { %s1393_s21 = sadd.s32 4294967295, %s1327_s20   ;;  %s803_s22 = sadd.s32 4294967294, %s1327_s20   ;;  %s1327_s20 = sphi %s1372_s20, %s23_s20   ;;  %s1323_s19 = sphi %s1370_s19, %s1730_s19   ;;  %s1319_s18 = sphi %s1368_s18, %s1729_s18   ;;  %s1315_s17 = sphi %s1366_s17, %s1728_s17   ;;  %s1311_s16 = sphi %s1364_s16, %s1727_s16   ;;  %s1307_s15 = sphi %s1362_s15, %s1726_s15  }
   0xc   : > { %p57_p0 = scmp.ne.s32.totalorder %s1311_s16, %s1307_s15  ;;  %p1696_p1 = scmp.eq.s32.totalorder %s1393_s21, 0 }
   0xd   : > { %p157_p3 = scmp.eq.s32.totalorder %s803_s22, 1  ;;  %p804_p5 = scmp.ge.s32.totalorder %s1327_s20, 1 }
   0xe   : > { %p1402_p4 = por %p1696_p1, %p57_p0  ;;  %p164_p7 = scmp.lt.s32.totalorder %s1327_s20, 3 }
   0xf   : > { %p1407_p6 = por %p157_p3, %p57_p0  ;;  %s1329_s26 = smov [#allocation7]  }
  0x10   : > { %s1706_s23 = scalar_select %p1402_p4, 1, 0 }
  0x11   : > { %s1707_s24 = scalar_select %p1407_p6, 1, 0 }
  0x12   : > { %p1412_p8 = pnand %p804_p5, %p164_p7  ;;  %s176_s27 = sshll.u32 %s1329_s26, 4  ;;  %s177_s27 = int_to_ptr.vmem [resolvable:$true] %s176_s27 }
  0x13   : > { %s35_s29 = sadd.s32 1, %s1323_s19  ;;  %s1710_s2 = sld [smem:[#allocation15_spill]] }
  0x14   : > { %s1708_s25 = scalar_select %p1412_p8, 1, 0 }
  0x15   : > { %p1077_p9 = pneg %p1412_p8 }
  0x17   : > { %p1421_p11 = pnand %p1077_p9, %p1696_p1 }
  0x19   : > { %s1149_s6 = scalar_lea.hbm %s1710_s2, 2048  ;;  %p1151_p13 = pneg %p1421_p11 }
  0x1a   : > { %p1150_p12 = scmp.ne.s32.totalorder %s1710_s2, %s1149_s6  ;;  %p1156_p5 = scmp.lt.u32.totalorder %s1149_s6, %s1710_s2 }
  0x1c   : > { %p1152_p0 = pnand %p1151_p13, %p1150_p12 }
  0x1e   : > { %p1153_p3 = pneg %p1152_p0 }
  0x20   : > { %p1158_p7 = pnand %p1156_p5, %p1153_p3 }
  0x22   : > { %1161 = shalt.err (!%p1158_p7)
}
  0x23   : > { %s1162_s11 = scalar_lea.vmem %s177_s27, 2048  ;;  %p1170_p2 = scmp.lt.s32.totalorder %s177_s27, %s177_s27 }
  0x24   : > { %p1163_p9 = scmp.ne.s32.totalorder %s177_s27, %s1162_s11  ;;  %p1171_p6 = scmp.lt.s32.totalorder %s1162_s11, %s1162_s11 }
  0x26   : > { %p1165_p10 = pnand %p1163_p9, %p1151_p13  ;;  %p1172_p4 = por %p1171_p6, %p1170_p2 }
  0x28   : > { %p1166_p1 = pneg %p1165_p10 }
  0x2a   : > { %p1173_p8 = pnand %p1172_p4, %p1166_p1 }
  0x2c   : > { %1176 = shalt.err (!%p1173_p8)
}
  0x2d   : > { %s1699_s12 = smov 128   ;;  %s1701_s13 = smov 8  }
  0x2e   : > { %1080 = dma.hbm_to_vmem [thread:$0]  (!%p1421_p11), %s1710_s2, 2048, %s177_s27, [#allocation6], %s1699_s12, %s1699_s12, %s1701_s13  }
  0x2f   : > { %p37_p1 = scmp.ge.s32.totalorder %s35_s29, 2  ;;  %s44_s26 = sadd.s32 1, %s1315_s17 }
  0x30   : > { %p51_p2 = scmp.ne.s32.totalorder %s1315_s17, %s1311_s16  ;;  %p52_p4 = scmp.eq.s32.totalorder %s1327_s20, 0 }
  0x31   : > { %s1732_s29 = smov (%p37_p1, %s35_s29), 0  ;;  %p1713_p8 = scmp.eq.s32.totalorder %s1393_s21, 1 }
  0x32   : > { %1711 = sst [smem:[#allocation13_spill]] %s1732_s29  ;;  %p1451_p6 = por %p52_p4, %p51_p2 }
  0x33   : > { %p1457_p10 = por %p1713_p8, %p51_p2  ;;  %s39_s5 = ssub.s32 %s1323_s19, %s1732_s29 }
  0x34   : > { %p1093_p12 = scmp.lt.s32.totalorder %s1327_s20, 2  ;;  %p42_p11 = scmp.eq.s32.totalorder %s39_s5, 0 }
  0x35   : > { %s193_s27 = sand.u32 1, %s1315_s17   ;;  %s824_s8 = sshll.u32 %s1323_s19, 11 }
  0x36   : > { %s807_s6 = sshll.u32 %s193_s27, 7  ;;  %s1715_s0 = sld [smem:[#allocation14_spill]] }
  0x37   : > { %s1466_s7 = scalar_select %p42_p11, %s1315_s17, %s44_s26  }
  0x38   : > { %s197_s14 = scalar_lea.vmem [#allocation2], %s807_s6  ;;  %p1478_p13 = pnand %p1093_p12, %p1451_p6 }
  0x39   : > { %s206_s22 = sshll.u32 %s197_s14, 4  ;;  %s1485_s9 = scalar_lea.hbm %s1692_s1, %s824_s8  ;;  %s1474_s22 = int_to_ptr.vmem [resolvable:$true] %s206_s22 }
  0x3a   : > { %s220_s10 = scalar_lea.vmem [#allocation5], %s807_s6  ;;  %s1489_s2 = scalar_lea.sflag [#allocation3], %s193_s27 }
  0x3b   : > { %s1487_s13 = sshll.u32 %s220_s10, 4  ;;  %p1179_p3 = pneg %p1478_p13  ;;  %s1521_s13 = int_to_ptr.vmem [resolvable:$true] %s1487_s13 }
  0x3c   : > { %s1472_s11 = scalar_lea.hbm %s1715_s0, %s824_s8  ;;  %s1182_s12 = scalar_lea.hbm %s1715_s0, 4096 }
  0x3d   : > { %s1177_s14 = scalar_lea.hbm %s1472_s11, 2048  ;;  %p1183_p9 = scmp.lt.u32.totalorder %s1472_s11, %s1715_s0 }
  0x3e   : > { %p1178_p0 = scmp.ne.s32.totalorder %s1472_s11, %s1177_s14  ;;  %p1184_p1 = scmp.lt.u32.totalorder %s1182_s12, %s1177_s14 }
  0x3f   : > { %p1186_p4 = scmp.lt.u32.totalorder %s1177_s14, %s1472_s11 }
  0x40   : > { %p1180_p5 = pnand %p1179_p3, %p1178_p0  ;;  %p1185_p2 = por %p1184_p1, %p1183_p9 }
  0x42   : > { %p1181_p7 = pneg %p1180_p5  ;;  %p1187_p6 = por %p1186_p4, %p1185_p2 }
  0x44   : > { %p1188_p8 = pnand %p1187_p6, %p1181_p7 }
  0x46   : > { %1191 = shalt.err (!%p1188_p8)
}
  0x47   : > { %s1192_s27 = scalar_lea.vmem %s1474_s22, 2048  ;;  %s1332_s29 = smov [#allocation2]  }
  0x48   : > { %p1193_p12 = scmp.ne.s32.totalorder %s1474_s22, %s1192_s27  ;;  %s1197_s6 = sshll.u32 %s1332_s29, 4  ;;  %s1198_s6 = int_to_ptr.vmem [resolvable:$false] %s1197_s6 }
  0x49   : > { %s1199_s10 = scalar_lea.vmem %s1198_s6, 4096  ;;  %p1200_p5 = scmp.lt.s32.totalorder %s1474_s22, %s1198_s6 }
  0x4a   : > { %p1195_p11 = pnand %p1193_p12, %p1179_p3  ;;  %p1201_p9 = scmp.lt.s32.totalorder %s1199_s10, %s1192_s27 }
  0x4c   : > { %p1196_p0 = pneg %p1195_p11  ;;  %p1202_p1 = por %p1201_p9, %p1200_p5 }
  0x4e   : > { %p1203_p2 = pnand %p1202_p1, %p1196_p0 }
  0x50   : > { %1206 = shalt.err (!%p1203_p2)
}
  0x51   : > { %s1717_s14 = smov 8   ;;  %s1718_s30 = smov 128  }
  0x52   : > { %1084 = dma.hbm_to_vmem [thread:$0]  (!%p1478_p13), %s1472_s11, 2048, %s1474_s22, %s1489_s2, %s1718_s30, %s1718_s30, %s1717_s14  }
  0x53   : > { %s216_s12 = sand.u32 1, %s1327_s20   ;;  %s1207_s8 = scalar_lea.hbm %s1485_s9, 2048 }
  0x54   : > { %s1524_s26 = scalar_lea.sflag [#allocation6], %s216_s12  ;;  %p1208_p7 = scmp.ne.s32.totalorder %s1485_s9, %s1207_s8 }
  0x55   : > { %s1212_s6 = scalar_lea.hbm %s1692_s1, 4096  ;;  %p1213_p8 = scmp.lt.u32.totalorder %s1485_s9, %s1692_s1 }
  0x56   : > { %p1210_p4 = pnand %p1208_p7, %p1179_p3  ;;  %p1214_p12 = scmp.lt.u32.totalorder %s1212_s6, %s1207_s8 }
  0x57   : > { %p1216_p0 = scmp.lt.u32.totalorder %s1207_s8, %s1485_s9 }
  0x58   : > { %p1211_p6 = pneg %p1210_p4  ;;  %p1215_p11 = por %p1214_p12, %p1213_p8 }
  0x5a   : > { %p1217_p5 = por %p1216_p0, %p1215_p11 }
  0x5c   : > { %p1218_p9 = pnand %p1217_p5, %p1211_p6 }
  0x5e   : > { %1221 = shalt.err (!%p1218_p9)
}
  0x5f   : > { %s1222_s2 = scalar_lea.vmem %s1521_s13, 2048  ;;  %s1333_s11 = smov [#allocation5]  }
  0x60   : > { %p1223_p1 = scmp.ne.s32.totalorder %s1521_s13, %s1222_s2  ;;  %s1227_s22 = sshll.u32 %s1333_s11, 4  ;;  %s1228_s22 = int_to_ptr.vmem [resolvable:$false] %s1227_s22 }
  0x61   : > { %s1229_s0 = scalar_lea.vmem %s1228_s22, 4096  ;;  %p1230_p4 = scmp.lt.s32.totalorder %s1521_s13, %s1228_s22 }
  0x62   : > { %p1225_p2 = pnand %p1223_p1, %p1179_p3  ;;  %p1231_p8 = scmp.lt.s32.totalorder %s1229_s0, %s1222_s2 }
  0x64   : > { %p1226_p7 = pneg %p1225_p2  ;;  %p1232_p12 = por %p1231_p8, %p1230_p4 }
  0x66   : > { %p1233_p11 = pnand %p1232_p12, %p1226_p7 }
  0x68   : > { %1236 = shalt.err (!%p1233_p11)
}
  0x69   : > { %1087 = dma.hbm_to_vmem [thread:$0]  (!%p1478_p13), %s1485_s9, 2048, %s1521_s13, %s1524_s26, %s1718_s30, %s1718_s30, %s1717_s14  }
  0x6a   : > { %p1719_p3 = scmp.ne.s32.totalorder %s1708_s25, 0 }
  0x6b   : > { %s1556_s12 = sand.u32 (!%p1719_p3), 1, %s1311_s16   ;;  %p1720_p6 = scmp.ne.s32.totalorder (!%p1719_p3), %s1706_s23, 0 }
  0x6c   : > { %239 = sbr.rel (%p1719_p3) target bundleno = 629 (0x275), region = 36  ;;  %s1559_s8 = sshll.u32 (!%p1719_p3), %s1556_s12, 7 }
  0x6d   : > { %s242_s5 = scalar_lea.sflag (!%p1719_p3), [#allocation3], %s1556_s12  ;;  %s1563_s27 = scalar_lea.vmem (!%p1719_p3), [#allocation2], %s1559_s8 }
  0x73   : > { %1290 = dma.done.wait (%p1720_p6), %s242_s5, 2048  }
  0x74   : > { %1292 = vsyncadd (%p1720_p6), %s242_s5, 4294965248  ;;  %s250_s25 = sand.u32 1, %s1393_s21   ;;  %s1571_s9 = scalar_lea.vmem [#allocation5], %s1559_s8 }
  0x75   : > { %s251_s13 = scalar_lea.sflag [#allocation6], %s250_s25 }
  0x76   : > { %1294 = dma.done.wait (%p1720_p6), %s251_s13, 2048  }
  0x77   : > { %1296 = vsyncadd (%p1720_p6), %s251_s13, 4294965248  ;;  %p1721_p13 = scmp.eq.s32.totalorder %s1393_s21, 0 }
  0x79   : > { %1298 = dma.done.wait (%p1721_p13), [#allocation6], 2048   ;;  %p1722_p0 = pmov %p1721_p13 }
  0x7a   : > { %v306_v0 = vld [vmem:[%s1571_s9] sm:$0xff]  ;;  %v307_v1 = vld [vmem:[%s1571_s9 + $0x8] sm:$0xff]  ;;  %v308_v2 = vld [vmem:[%s1571_s9 + $0x10] sm:$0xff]  ;;  %s1617_s14 = scalar_lea.vmem [#allocation8], %s1559_s8  ;;  %s826_s30 = sshll.u32 %s1319_s18, 11 }
  0x7b   : > { %1300 = vsyncadd (%p1722_p0), [#allocation6], 4294965248  ;;  %v1003_v3 = vpack.c.bf16 %v307_v1, %v306_v0  ;;  %v309_v4 = vld [vmem:[%s1571_s9 + $0x18] sm:$0xff]  ;;  %v310_v6 = vld [vmem:[%s1571_s9 + $0x20] sm:$0xff]  ;;  %s683_s26 = sshll.u32 %s1617_s14, 4  ;;  %s1638_s10 = scalar_lea.hbm %s1695_s4, %s826_s30  ;;  %s1640_s26 = int_to_ptr.vmem [resolvable:$true] %s683_s26 }
  0x7c   : > { %v1007_v5 = vpack.c.bf16 %v309_v4, %v308_v2  ;;  %v311_v7 = vld [vmem:[%s1571_s9 + $0x28] sm:$0xff]  ;;  %v290_v9 = vld [vmem:[%s1563_s27] sm:$0xff]  ;;  %v312_v10 = vld [vmem:[%s1571_s9 + $0x30] sm:$0xff]  ;;  %s668_s18 = scalar_lea.sflag [#allocation4], %s1556_s12  ;;  %s1237_s2 = scalar_lea.vmem %s1640_s26, 2048 }
  0x7d   : > { %1004 = vmatprep.subr.bf16.mxu0 %v1003_v3  ;;  %v1011_v8 = vpack.c.bf16 %v311_v7, %v310_v6  ;;  %v313_v11 = vld [vmem:[%s1571_s9 + $0x38] sm:$0xff]  ;;  %923 = vmatprep.mubr.f32.mxu0 %v290_v9  ;;  %v314_v13 = vld [vmem:[%s1571_s9 + $0x40] sm:$0xff]  ;;  %v315_v14 = vld [vmem:[%s1571_s9 + $0x48] sm:$0xff]  ;;  %p1238_p5 = scmp.ne.s32.totalorder %s1640_s26, %s1237_s2  ;;  %s1334_s11 = smov [#allocation8]  }
  0x7e   : > { %1006 = vmatpush3.bf16.msra.mxu0 %v1003_v3  ;;  %v1015_v12 = vpack.c.bf16 %v313_v11, %v312_v10  ;;  %v467_v15 = vld [vmem:[#allocation7] sm:$0xff]  ;;  %v468_v16 = vld [vmem:[#allocation7 + $0x8] sm:$0xff]  ;;  %v469_v17 = vld [vmem:[#allocation7 + $0x10] sm:$0xff]  ;;  %v1019_v21 = vpack.c.bf16 %v315_v14, %v314_v13  ;;  %s1241_s22 = sshll.u32 %s1334_s11, 4  ;;  %s1242_s22 = int_to_ptr.vmem [resolvable:$false] %s1241_s22 }
  0x7f   : > { %1008 = vmatprep.subr.bf16.mxu0 %v1007_v5  ;;  %v470_v18 = vld [vmem:[#allocation7 + $0x18] sm:$0xff]  ;;  %v1035_v19 = vpack.c.bf16 %v468_v16, %v467_v15  ;;  %v471_v22 = vld [vmem:[#allocation7 + $0x20] sm:$0xff]  ;;  %v472_v23 = vld [vmem:[#allocation7 + $0x28] sm:$0xff]  ;;  %p1239_p9 = pnand %p1238_p5, %p1457_p10  ;;  %s1243_s0 = scalar_lea.vmem %s1242_s22, 4096 }
  0x80   : > { %v1039_v20 = vpack.c.bf16 %v470_v18, %v469_v17  ;;  %v316_v24 = vld [vmem:[%s1571_s9 + $0x50] sm:$0xff]  ;;  %v317_v25 = vld [vmem:[%s1571_s9 + $0x58] sm:$0xff]  ;;  %v1043_v26 = vpack.c.bf16 %v472_v23, %v471_v22  ;;  %v318_v30 = vld [vmem:[%s1571_s9 + $0x60] sm:$0xff]  ;;  %p1244_p2 = scmp.lt.s32.totalorder %s1640_s26, %s1242_s22  ;;  %p1245_p7 = scmp.lt.s32.totalorder %s1243_s0, %s1237_s2 }
  0x81   : > { %1036 = vmatprep.subr.bf16.mxu1 %v1035_v19  ;;  %v1023_v27 = vpack.c.bf16 %v317_v25, %v316_v24  ;;  %v473_v28 = vld [vmem:[#allocation7 + $0x30] sm:$0xff]  ;;  %v474_v29 = vld [vmem:[#allocation7 + $0x38] sm:$0xff]  ;;  %v319_v31 = vld [vmem:[%s1571_s9 + $0x68] sm:$0xff]  ;;  %p1240_p1 = pneg %p1239_p9 }
  0x82   : > { %1010 = vmatpush3.bf16.msra.mxu0 %v1007_v5  ;;  %1038 = vmatpush3.bf16.msra.mxu1 %v1035_v19  ;;  %v1047_v32 = vpack.c.bf16 %v474_v29, %v473_v28  ;;  %v1027_v33 = vpack.c.bf16 %v319_v31, %v318_v30  ;;  %v475_v34 = vld [vmem:[#allocation7 + $0x40] sm:$0xff]  ;;  %v476_v35 = vld [vmem:[#allocation7 + $0x48] sm:$0xff]  ;;  %v320_v36 = vld [vmem:[%s1571_s9 + $0x70] sm:$0xff]  ;;  %p1246_p4 = por %p1245_p7, %p1244_p2 }
  0x83   : > { %1012 = vmatprep.subr.bf16.mxu0 %v1011_v8  ;;  %1040 = vmatprep.subr.bf16.mxu1 %v1039_v20  ;;  %v321_v37 = vld [vmem:[%s1571_s9 + $0x78] sm:$0xff]  ;;  %v1051_v38 = vpack.c.bf16 %v476_v35, %v475_v34  ;;  %v477_v40 = vld [vmem:[#allocation7 + $0x50] sm:$0xff]  ;;  %v479_v43 = vld [vmem:[#allocation7 + $0x60] sm:$0xff] }
  0x84   : > { %v1031_v39 = vpack.c.bf16 %v321_v37, %v320_v36  ;;  %v478_v41 = vld [vmem:[#allocation7 + $0x58] sm:$0xff]  ;;  %v480_v44 = vld [vmem:[#allocation7 + $0x68] sm:$0xff]  ;;  %v292_v47 = vld [vmem:[%s1563_s27 + $0x10] sm:$0xff]  ;;  %p1247_p8 = pnand %p1246_p4, %p1240_p1 }
  0x85   : > { %v1055_v42 = vpack.c.bf16 %v478_v41, %v477_v40  ;;  %v291_v45 = vld [vmem:[%s1563_s27 + $0x8] sm:$0xff]  ;;  %v1059_v46 = vpack.c.bf16 %v480_v44, %v479_v43  ;;  %v481_v48 = vld [vmem:[#allocation7 + $0x70] sm:$0xff]  ;;  %v482_v49 = vld [vmem:[#allocation7 + $0x78] sm:$0xff] }
  0x86   : > { %1014 = vmatpush3.bf16.msra.mxu0 %v1011_v8  ;;  %1042 = vmatpush3.bf16.msra.mxu1 %v1039_v20  ;;  %v293_v50 = vld [vmem:[%s1563_s27 + $0x18] sm:$0xff]  ;;  %v1063_v51 = vpack.c.bf16 %v482_v49, %v481_v48  ;;  %v294_v52 = vld [vmem:[%s1563_s27 + $0x20] sm:$0xff]  ;;  %v295_v53 = vld [vmem:[%s1563_s27 + $0x28] sm:$0xff] }
  0x87   : > { %1016 = vmatprep.subr.bf16.mxu0 %v1015_v12  ;;  %1044 = vmatprep.subr.bf16.mxu1 %v1043_v26  ;;  %v296_v54 = vld [vmem:[%s1563_s27 + $0x30] sm:$0xff]  ;;  %v297_v55 = vld [vmem:[%s1563_s27 + $0x38] sm:$0xff]  ;;  %v298_v56 = vld [vmem:[%s1563_s27 + $0x40] sm:$0xff] }
  0x88   : > { %v299_v57 = vld [vmem:[%s1563_s27 + $0x48] sm:$0xff]  ;;  %v300_v58 = vld [vmem:[%s1563_s27 + $0x50] sm:$0xff]  ;;  %v301_v59 = vld [vmem:[%s1563_s27 + $0x58] sm:$0xff] }
  0x89   : > { %v302_v60 = vld [vmem:[%s1563_s27 + $0x60] sm:$0xff]  ;;  %v303_v61 = vld [vmem:[%s1563_s27 + $0x68] sm:$0xff]  ;;  %v304_v62 = vld [vmem:[%s1563_s27 + $0x70] sm:$0xff] }
  0x8a   : > { %1018 = vmatpush3.bf16.msra.mxu0 %v1015_v12  ;;  %1046 = vmatpush3.bf16.msra.mxu1 %v1043_v26  ;;  %v305_v63 = vld [vmem:[%s1563_s27 + $0x78] sm:$0xff]  ;;  %v818_v16 = vld [vmem:[%s1694_s3] ss:$0 sm:$0xff] }
  0x8b   : > { %1020 = vmatprep.subr.bf16.mxu0 %v1019_v21  ;;  %1048 = vmatprep.subr.bf16.mxu1 %v1047_v32 }
  0x8e   : > { %1022 = vmatpush3.bf16.msra.mxu0 %v1019_v21  ;;  %1050 = vmatpush3.bf16.msra.mxu1 %v1047_v32 }
  0x8f   : > { %1024 = vmatprep.subr.bf16.mxu0 %v1023_v27  ;;  %1052 = vmatprep.subr.bf16.mxu1 %v1051_v38 }
  0x92   : > { %1026 = vmatpush3.bf16.msra.mxu0 %v1023_v27  ;;  %1054 = vmatpush3.bf16.msra.mxu1 %v1051_v38 }
  0x93   : > { %1028 = vmatprep.subr.bf16.mxu0 %v1027_v33  ;;  %1056 = vmatprep.subr.bf16.mxu1 %v1055_v42 }
  0x96   : > { %1030 = vmatpush3.bf16.msra.mxu0 %v1027_v33  ;;  %1058 = vmatpush3.bf16.msra.mxu1 %v1055_v42 }
  0x97   : > { %1032 = vmatprep.subr.bf16.mxu0 %v1031_v39  ;;  %1060 = vmatprep.subr.bf16.mxu1 %v1059_v46 }
  0x9a   : > { %1034 = vmatpush3.bf16.msra.mxu0 %v1031_v39  ;;  %1062 = vmatpush3.bf16.msra.mxu1 %v1059_v46 }
  0x9b   : > { %1064 = vmatprep.subr.bf16.mxu1 %v1063_v51 }
  0x9d   : > { %924 = vmatmul.mubr.f32.vlgmr.msra.gmra.mrb[0].mxu0 %v291_v45 }
  0x9e   : > { %926 = vmatprep.mubr.f32.mxu0 %v292_v47  ;;  %1066 = vmatpush3.bf16.msra.mxu1 %v1063_v51 }
  0xa1   : > { %927 = vmatmul.mubr.f32.gmra.mrb[2].mxu0 %v293_v50 }
  0xa2   : > { %929 = vmatprep.mubr.f32.mxu0 %v294_v52 }
  0xa5   : > { %930 = vmatmul.mubr.f32.gmra.mrb[4].mxu0 %v295_v53 }
  0xa6   : > { %932 = vmatprep.mubr.f32.mxu0 %v296_v54 }
  0xa9   : > { %933 = vmatmul.mubr.f32.gmra.mrb[6].mxu0 %v297_v55 }
  0xaa   : > { %935 = vmatprep.mubr.f32.mxu0 %v298_v56 }
  0xad   : > { %936 = vmatmul.mubr.f32.gmra.mrb[8].mxu0 %v299_v57 }
  0xae   : > { %938 = vmatprep.mubr.f32.mxu0 %v300_v58 }
  0xb1   : > { %939 = vmatmul.mubr.f32.gmra.mrb[10].mxu0 %v301_v59 }
  0xb2   : > { %941 = vmatprep.mubr.f32.mxu0 %v302_v60 }
  0xb5   : > { %942 = vmatmul.mubr.f32.gmra.mrb[12].mxu0 %v303_v61 }
  0xb6   : > { %944 = vmatprep.mubr.f32.mxu0 %v304_v62 }
  0xb9   : > { %945 = vmatmul.mubr.f32.gmra.mrb[14].mxu0 %v305_v63 }
 0x170   : > { %v925_v0 = vpop.f32.mrb[0].mxu0 }
 0x171   : > { %v388_v1 = vpop.f32.mrb[1].mxu0 }
 0x172   : > { %979 = vmatprep.mubr.f32.mxu1 %v388_v1 }
 0x173   : > { %980 = vmatmul.mubr.f32.vlgmr.msra.gmra.mrb[0].mxu1 %v925_v0 }
 0x174   : > { %v928_v2 = vpop.f32.mrb[2].mxu0 }
 0x175   : > { %v398_v3 = vpop.f32.mrb[3].mxu0 }
 0x176   : > { %982 = vmatprep.mubr.f32.mxu1 %v398_v3 }
 0x177   : > { %983 = vmatmul.mubr.f32.gmra.mrb[2].mxu1 %v928_v2 }
 0x178   : > { %v931_v4 = vpop.f32.mrb[4].mxu0 }
 0x179   : > { %v408_v5 = vpop.f32.mrb[5].mxu0 }
 0x17a   : > { %985 = vmatprep.mubr.f32.mxu1 %v408_v5 }
 0x17b   : > { %986 = vmatmul.mubr.f32.gmra.mrb[4].mxu1 %v931_v4 }
 0x17c   : > { %v934_v6 = vpop.f32.mrb[6].mxu0 }
 0x17d   : > { %v418_v7 = vpop.f32.mrb[7].mxu0 }
 0x17e   : > { %988 = vmatprep.mubr.f32.mxu1 %v418_v7 }
 0x17f   : > { %989 = vmatmul.mubr.f32.gmra.mrb[6].mxu1 %v934_v6 }
 0x180   : > { %v937_v8 = vpop.f32.mrb[8].mxu0 }
 0x181   : > { %v428_v9 = vpop.f32.mrb[9].mxu0 }
 0x182   : > { %991 = vmatprep.mubr.f32.mxu1 %v428_v9 }
 0x183   : > { %992 = vmatmul.mubr.f32.gmra.mrb[8].mxu1 %v937_v8 }
 0x184   : > { %v940_v10 = vpop.f32.mrb[10].mxu0 }
 0x185   : > { %v438_v11 = vpop.f32.mrb[11].mxu0 }
 0x186   : > { %994 = vmatprep.mubr.f32.mxu1 %v438_v11 }
 0x187   : > { %995 = vmatmul.mubr.f32.gmra.mrb[10].mxu1 %v940_v10 }
 0x188   : > { %v943_v12 = vpop.f32.mrb[12].mxu0 }
 0x189   : > { %v448_v13 = vpop.f32.mrb[13].mxu0 }
 0x18a   : > { %997 = vmatprep.mubr.f32.mxu1 %v448_v13 }
 0x18b   : > { %998 = vmatmul.mubr.f32.gmra.mrb[12].mxu1 %v943_v12 }
 0x18c   : > { %v946_v14 = vpop.f32.mrb[14].mxu0 }
 0x18d   : > { %v458_v15 = vpop.f32.mrb[15].mxu0 }
 0x18e   : > { %1000 = vmatprep.mubr.f32.mxu1 %v458_v15 }
 0x18f   : > { %1001 = vmatmul.mubr.f32.gmra.mrb[14].mxu1 %v946_v14 }
 0x246   : > { %v981_v17 = vpop.f32.mrb[0].mxu1 }
 0x247   : > { %v636_v18 = vadd.f32 %v981_v17, %v818_v16  ;;  %v549_v19 = vpop.f32.mrb[1].mxu1 }
 0x248   : > { %v635_v20 = vadd.f32 %v818_v16, %v549_v19 }
 0x249   : > { %652 = vst [vmem:[%s1617_s14 + $0x8] sm:$0xff] %v636_v18 }
 0x24a   : > { %651 = vst [vmem:[%s1617_s14] sm:$0xff] %v635_v20  ;;  %v984_v21 = vpop.f32.mrb[2].mxu1 }
 0x24b   : > { %v638_v22 = vadd.f32 %v984_v21, %v818_v16  ;;  %v559_v23 = vpop.f32.mrb[3].mxu1 }
 0x24c   : > { %v637_v24 = vadd.f32 %v818_v16, %v559_v23 }
 0x24d   : > { %654 = vst [vmem:[%s1617_s14 + $0x18] sm:$0xff] %v638_v22 }
 0x24e   : > { %653 = vst [vmem:[%s1617_s14 + $0x10] sm:$0xff] %v637_v24  ;;  %v987_v25 = vpop.f32.mrb[4].mxu1 }
 0x24f   : > { %v640_v26 = vadd.f32 %v987_v25, %v818_v16  ;;  %v569_v27 = vpop.f32.mrb[5].mxu1 }
 0x250   : > { %v639_v28 = vadd.f32 %v818_v16, %v569_v27 }
 0x251   : > { %656 = vst [vmem:[%s1617_s14 + $0x28] sm:$0xff] %v640_v26 }
 0x252   : > { %655 = vst [vmem:[%s1617_s14 + $0x20] sm:$0xff] %v639_v28  ;;  %v990_v29 = vpop.f32.mrb[6].mxu1 }
 0x253   : > { %v642_v30 = vadd.f32 %v990_v29, %v818_v16  ;;  %v579_v31 = vpop.f32.mrb[7].mxu1 }
 0x254   : > { %v641_v32 = vadd.f32 %v818_v16, %v579_v31 }
 0x255   : > { %658 = vst [vmem:[%s1617_s14 + $0x38] sm:$0xff] %v642_v30 }
 0x256   : > { %657 = vst [vmem:[%s1617_s14 + $0x30] sm:$0xff] %v641_v32  ;;  %v993_v33 = vpop.f32.mrb[8].mxu1 }
 0x257   : > { %v644_v34 = vadd.f32 %v993_v33, %v818_v16  ;;  %v589_v35 = vpop.f32.mrb[9].mxu1 }
 0x258   : > { %v643_v36 = vadd.f32 %v818_v16, %v589_v35 }
 0x259   : > { %660 = vst [vmem:[%s1617_s14 + $0x48] sm:$0xff] %v644_v34 }
 0x25a   : > { %659 = vst [vmem:[%s1617_s14 + $0x40] sm:$0xff] %v643_v36  ;;  %v996_v37 = vpop.f32.mrb[10].mxu1 }
 0x25b   : > { %v646_v38 = vadd.f32 %v996_v37, %v818_v16  ;;  %v599_v39 = vpop.f32.mrb[11].mxu1 }
 0x25c   : > { %v645_v40 = vadd.f32 %v818_v16, %v599_v39 }
 0x25d   : > { %662 = vst [vmem:[%s1617_s14 + $0x58] sm:$0xff] %v646_v38 }
 0x25e   : > { %661 = vst [vmem:[%s1617_s14 + $0x50] sm:$0xff] %v645_v40  ;;  %v999_v41 = vpop.f32.mrb[12].mxu1 }
 0x25f   : > { %v648_v42 = vadd.f32 %v999_v41, %v818_v16  ;;  %v609_v43 = vpop.f32.mrb[13].mxu1 }
 0x260   : > { %v647_v44 = vadd.f32 %v818_v16, %v609_v43 }
 0x261   : > { %664 = vst [vmem:[%s1617_s14 + $0x68] sm:$0xff] %v648_v42 }
 0x262   : > { %663 = vst [vmem:[%s1617_s14 + $0x60] sm:$0xff] %v647_v44  ;;  %v1002_v45 = vpop.f32.mrb[14].mxu1 }
 0x263   : > { %v650_v46 = vadd.f32 %v1002_v45, %v818_v16  ;;  %v619_v47 = vpop.f32.mrb[15].mxu1 }
 0x264   : > { %v649_v48 = vadd.f32 %v818_v16, %v619_v47 }
 0x265   : > { %666 = vst [vmem:[%s1617_s14 + $0x78] sm:$0xff] %v650_v46 }
 0x266   : > { %665 = vst [vmem:[%s1617_s14 + $0x70] sm:$0xff] %v649_v48 }
 0x267   : > { %1250 = shalt.err (!%p1247_p8)
}
 0x268   : > { %s1251_s8 = scalar_lea.hbm %s1638_s10, 2048  ;;  %s1255_s25 = scalar_lea.hbm %s1695_s4, 4096 }
 0x269   : > { %p1252_p12 = scmp.ne.s32.totalorder %s1638_s10, %s1251_s8  ;;  %p1256_p6 = scmp.lt.u32.totalorder %s1638_s10, %s1695_s4 }
 0x26a   : > { %p1257_p13 = scmp.lt.u32.totalorder %s1255_s25, %s1251_s8  ;;  %p1259_p5 = scmp.lt.u32.totalorder %s1251_s8, %s1638_s10 }
 0x26b   : > { %p1253_p11 = pnand %p1252_p12, %p1457_p10 }
 0x26c   : > { %p1258_p0 = por %p1257_p13, %p1256_p6 }
 0x26d   : > { %p1254_p3 = pneg %p1253_p11 }
 0x26e   : > { %p1260_p9 = por %p1259_p5, %p1258_p0 }
 0x270   : > { %p1261_p1 = pnand %p1260_p9, %p1254_p3 }
 0x272   : > { %1264 = shalt.err (!%p1261_p1)
}
 0x273   : > { %s1335_s21 = smov 128   ;;  %s1336_s23 = smov 8  }
 0x274   : > { %1075 = dma.vmem_to_hbm [thread:$0]  (%p1457_p10), %s1640_s26, 2048, %s1638_s10, %s668_s18, %s1335_s21, %s1335_s21, %s1336_s23  }
 0x275 PF: > { %s698_s14 = sand.u32 1, %s1307_s15   ;;  %p1723_p2 = scmp.ne.s32.totalorder %s1707_s24, 0 }
 0x276   : > { %p1724_p7 = scmp.ge.s32.totalorder %s1327_s20, 2  ;;  %s699_s30 = scalar_lea.sflag [#allocation4], %s698_s14 }
 0x278   : > { %p1089_p4 = pnand %p1724_p7, %p1723_p2 }
 0x27a   : > { %1302 = dma.done.wait (!%p1089_p4), %s699_s30, 2048  }
 0x27b   : > { %1304 = vsyncadd (!%p1089_p4), %s699_s30, 4294965248  ;;  %s23_s20 = sadd.s32 1, %s1327_s20   ;;  %s1725_s28 = sld [smem:[#allocation13_spill]] }
 0x27c   : > { %p20_p8 = scmp.ge.s32.totalorder %s23_s20, 4   ;;  %s1726_s15 = smov %s1311_s16 }
 0x27d   : > { %s1727_s16 = smov %s1315_s17  ;;  %s1728_s17 = smov %s1466_s7 }
 0x27e   : > { %s1729_s18 = smov %s1323_s19  ;;  %22 = sbr.rel (!%p20_p8) target bundleno = 11 (0xb), region = 98 }
 0x281   : > { %s1730_s19 = smov %s1725_s28 }
 0x285   :  { %704 = vsyncpa [#allocation3], 1 }
 0x286   :  { %706 = vsyncpa [#allocation3 + $0x1], 1 }
 0x287   :  { %707 = vsyncpa [#allocation6], 1 }
 0x288   :  { %709 = vsyncpa [#allocation6 + $0x1], 1 }
 0x289   :  { %710 = vsyncpa [#allocation4], 1 }
 0x28a   :  { %712 = vsyncpa [#allocation4 + $0x1], 1 }

</bundles_post_ra>
